<compile_context>
chip_gen: v7x
topology: tpu7x:2x2x1
jax: 0.10.0
libtpu: 0.0.40
codegen_flags: <defaults>
</compile_context>

<pallas_src>
import jax
import jax.numpy as jnp
from jax import lax
from jax.experimental import pallas as pl
from jax.experimental.pallas import tpu as pltpu


_SUBLANES = 8
_LANES = 128


# ------------------------------ helpers ------------------------------------

def _gelu_tanh(x):
    # tanh-approximate GELU (EUP-friendly; same formula used in the reference)
    c = 0.7978845608028654  # sqrt(2/pi)
    return 0.5 * x * (1.0 + jnp.tanh(c * (x + 0.044715 * x * x * x)))


def _round_up(x, m):
    return ((x + m - 1) // m) * m


# ------------------------------ Pallas kernel ------------------------------

def shallow_ensemble_forward(input_ids, emb_table, w1, b1, wc, bc, bias,
                             labels, mask, *, tm=512,
                             compute_dtype=jnp.float32):
    """Forward pass of the shallow ensembled token-classification head.

    input_ids : (N,)    int32 flattened token ids
    emb_table : (V, H)  token embedding table (gather fused into the kernel)
    w1, b1    : (H, H), (1, H)  hidden projection
    wc, bc    : (H, C), (1, C)  classifier
    bias      : (1, C)  ensemble / debias bias added to logits inside the loss
    labels    : (N,)    int32 token labels
    mask      : (N, 1)  f32 attention mask

    Returns (logits (N, C) f32, loss scalar f32).
    For v6e/v7x pass compute_dtype=jnp.bfloat16 to use the bf16 MXU path
    (accumulation stays f32); loosen any correctness tolerances accordingly.
    """
    N = input_ids.shape[0]
    V, H = emb_table.shape
    C = wc.shape[1]

    # Block-size selection: big tiles amortize the ~0.35 us per-grid-step
    # overhead, but keep >= 2 row blocks when N allows so the "parallel" grid
    # axis can shard across both TensorCores on v7x (costs ~nothing on
    # single-TC v5e/v6e).
    tm_eff = max(_SUBLANES, min(tm, _round_up(pl.cdiv(N, 2), _SUBLANES)))
    num_blocks = pl.cdiv(N, tm_eff)
    c_pad = _round_up(C, _LANES)          # lane-dense logits -> unmasked vst

    # ---------- wrapper-side layout plumbing (no (N,H) activation copies) ---
    ids2d = input_ids.reshape(N, 1).astype(jnp.int32)
    labels2d = labels.reshape(N, 1).astype(jnp.int32)
    mask2d = mask.reshape(N, 1).astype(jnp.float32)

    embt_c = emb_table.astype(compute_dtype)
    w1_c = w1.astype(compute_dtype)
    b1_f = b1.astype(jnp.float32)
    wc_p = jnp.zeros((H, c_pad), compute_dtype).at[:, :C].set(
        wc.astype(compute_dtype))
    bc_p = jnp.zeros((1, c_pad), jnp.float32).at[:, :C].set(
        bc.astype(jnp.float32))
    # classifier bias + ensemble bias folded into one stream for the loss path;
    # padded class lanes hold -1e30 so their exp() underflows to exactly 0 and
    # no per-column masking is needed inside the kernel.
    beff_p = jnp.full((1, c_pad), -1e30, jnp.float32).at[:, :C].set(
        (bc + bias).astype(jnp.float32))

    # ------------------------------ kernel ----------------------------------
    def kernel(ids_ref,        # (tm, 1) int32  token ids tile
               embt_ref,       # (V, H)         embedding table (constant)
               w1_ref,         # (H, H)
               b1_ref,         # (1, H)
               wc_ref,         # (H, c_pad)
               bc_ref,         # (1, c_pad)
               beff_ref,       # (1, c_pad)     bc + bias (loss path)
               lab_ref,        # (tm, 1) int32
               mask_ref,       # (tm, 1) f32
               logits_ref,     # (tm, c_pad)    lane-dense logits tile
               parts_ref):     # (8, 128)       packed per-block partial sums
        i = pl.program_id(0)

        # Fused embedding gather: exact one-hot row selection on the MXU
        # (each one-hot row has a single 1.0, so the selection is exact).
        # TODO(synk): for large vocabularies (table >> VMEM) switch to
        # scalar-prefetched input_ids + per-row DMA gather instead.
        vocab_ids = lax.broadcasted_iota(jnp.int32, (tm_eff, V), 1)
        onehot = (vocab_ids == ids_ref[...]).astype(compute_dtype)
        x = jnp.dot(onehot, embt_ref[...],
                    preferred_element_type=jnp.float32)            # (tm, H)

        h = jnp.dot(x.astype(compute_dtype), w1_ref[...],
                    preferred_element_type=jnp.float32) + b1_ref[...]
        h = _gelu_tanh(h)                                          # (tm, H) f32

        # Row inputs are NOT padded in HBM; the tail grid block sees garbage
        # rows in VMEM.  Zero h for those rows (kills their logits / loss /
        # h^2 contributions) and zero their mask.
        row_ids = i * tm_eff + lax.broadcasted_iota(jnp.int32, (tm_eff, 1), 0)
        row_valid = row_ids < N                                    # (tm, 1)
        h = h * row_valid.astype(jnp.float32)

        mm = jnp.dot(h.astype(compute_dtype), wc_ref[...],
                     preferred_element_type=jnp.float32)           # (tm, c_pad)
        logits_ref[...] = mm + bc_ref[...]

        # debiasing loss: masked CE on (logits + bias); padded class lanes of
        # beff are -1e30 so no column masking is needed (exp underflows to 0).
        adj = mm + beff_ref[...]                                   # (tm, c_pad)
        m = jnp.max(adj, axis=-1, keepdims=True)
        lse = m + jnp.log(jnp.sum(jnp.exp(adj - m), axis=-1, keepdims=True))
        col_ids = lax.broadcasted_iota(jnp.int32, (tm_eff, c_pad), 1)
        label_term = jnp.sum(jnp.where(col_ids == lab_ref[...], adj, 0.0),
                             axis=-1, keepdims=True)               # (tm, 1)
        mask_eff = jnp.where(row_valid, mask_ref[...], 0.0)        # (tm, 1)
        block_loss = jnp.sum((lse - label_term) * mask_eff,
                             axis=0, keepdims=True)                # (1, 1)

        # hidden-state L2 penalty (invalid rows already zeroed via h)
        hs_block = jnp.sum(jnp.sum(h * h, axis=-1, keepdims=True),
                           axis=0, keepdims=True)                  # (1, 1)

        # Single packed partials block: lane 0 = masked-CE sum, lane 1 = sum h^2.
        lane_ids = lax.broadcasted_iota(jnp.int32, (_SUBLANES, _LANES), 1)
        parts_ref[...] = jnp.where(
            lane_ids == 0,
            jnp.broadcast_to(block_loss, (_SUBLANES, _LANES)),
            jnp.where(lane_ids == 1,
                      jnp.broadcast_to(hs_block, (_SUBLANES, _LANES)),
                      0.0))

    logits_pad, parts = pl.pallas_call(
        kernel,
        out_shape=(
            jax.ShapeDtypeStruct((N, c_pad), jnp.float32),
            jax.ShapeDtypeStruct((_SUBLANES * num_blocks, _LANES), jnp.float32),
        ),
        grid_spec=pltpu.PrefetchScalarGridSpec(
            num_scalar_prefetch=0,
            grid=(num_blocks,),
            in_specs=[
                pl.BlockSpec((tm_eff, 1), lambda i: (i, 0)),       # input_ids
                pl.BlockSpec((V, H), lambda i: (0, 0)),            # emb table
                pl.BlockSpec((H, H), lambda i: (0, 0)),            # W1
                pl.BlockSpec((1, H), lambda i: (0, 0)),            # b1
                pl.BlockSpec((H, c_pad), lambda i: (0, 0)),        # Wc (lane pad)
                pl.BlockSpec((1, c_pad), lambda i: (0, 0)),        # bc
                pl.BlockSpec((1, c_pad), lambda i: (0, 0)),        # bc + bias
                pl.BlockSpec((tm_eff, 1), lambda i: (i, 0)),       # labels
                pl.BlockSpec((tm_eff, 1), lambda i: (i, 0)),       # mask
            ],
            out_specs=[
                pl.BlockSpec((tm_eff, c_pad), lambda i: (i, 0)),         # logits
                pl.BlockSpec((_SUBLANES, _LANES), lambda i: (i, 0)),     # partials
            ],
        ),
        # Constant-operand blocks (emb_table/W1/Wc/biases) could additionally
        # be single-buffered (pipeline_mode=pl.Buffered(1)) on 64-MiB-VMEM v7x
        # once H grows; at these shapes total VMEM is far below the default
        # scoped limit, so default double-buffering / vmem_limit is kept.
        compiler_params=pltpu.CompilerParams(
            # no resident accumulator -> the row grid is embarrassingly
            # parallel (shardable across TensorCores on multi-TC chips).
            dimension_semantics=("parallel",),
        ),
    )(ids2d, embt_c, w1_c, b1_f, wc_p, bc_p, beff_p, labels2d, mask2d)

    # ---------------- wrapper-side final reduction of partials --------------
    loss_sum = jnp.sum(parts[0::_SUBLANES, 0])     # one packed row per block
    hs_sum = jnp.sum(parts[0::_SUBLANES, 1])
    denom = jnp.maximum(jnp.sum(mask2d), 1.0)
    loss = loss_sum / denom + 0.01 * hs_sum / float(N * H)

    # NOTE: slicing off the class-lane padding is one extra (small) HBM pass;
    # downstream consumers should slice lazily / fuse this into the next op.
    logits = logits_pad[:, :C]
    return logits, loss


# --------------------------- pure-JAX reference ----------------------------

def reference_forward(input_ids, emb_table, w1, b1, wc, bc, bias, labels, mask):
    emb = emb_table[input_ids]                       # (N, H)
    h = _gelu_tanh(emb @ w1 + b1)
    logits = h @ wc + bc
    adj = logits + bias
    lse = jax.scipy.special.logsumexp(adj, axis=-1)
    label_term = jnp.take_along_axis(adj, labels[:, None], axis=-1)[:, 0]
    nll = lse - label_term
    msk = mask[:, 0]
    loss = jnp.sum(nll * msk) / jnp.maximum(jnp.sum(msk), 1.0)
    loss = loss + 0.01 * jnp.mean(h * h)
    return logits, loss


# ---------------------------------- main -----------------------------------

if __name__ == "__main__":
    # batch, seq, hidden, num_labels, vocab.  N = 142 is NOT a multiple of the
    # row tile, so the in-kernel tail-row masking path is exercised (2 blocks).
    B, S, H, C, V = 2, 71, 128, 8, 64
    N = B * S

    key = jax.random.PRNGKey(0)
    k_emb, k_w1, k_wc, k_ids, k_lab, k_bias = jax.random.split(key, 6)

    # deterministic "parameters" of the shallow ensembled model
    emb_table = jax.random.normal(k_emb, (V, H), jnp.float32) * 0.02
    w1 = jax.random.normal(k_w1, (H, H), jnp.float32) * (1.0 / jnp.sqrt(H))
    b1 = jnp.zeros((1, H), jnp.float32)
    wc = jax.random.normal(k_wc, (H, C), jnp.float32) * (1.0 / jnp.sqrt(H))
    bc = jnp.zeros((1, C), jnp.float32)

    # inputs = {'input_ids', 'attention_mask'}, labels, bias
    input_ids = jax.random.randint(k_ids, (B, S), 0, V, jnp.int32)
    attention_mask = jnp.ones((B, S), jnp.int32).at[1, S - 10:].set(0)  # ragged
    labels = jax.random.randint(k_lab, (B, S), 0, C, jnp.int32)
    ens_bias = jax.random.normal(k_bias, (C,), jnp.float32) * 0.1

    # glue: token flatten only (embedding gather now happens inside the kernel)
    ids_flat = input_ids.reshape(N)
    labels_flat = labels.reshape(N)
    mask_flat = attention_mask.reshape(N, 1).astype(jnp.float32)
    bias2d = ens_bias.reshape(1, C)

    logits, loss = shallow_ensemble_forward(
        ids_flat, emb_table, w1, b1, wc, bc, bias2d, labels_flat, mask_flat,
        tm=512)
    jax.block_until_ready((logits, loss))

    ref_logits, ref_loss = reference_forward(
        ids_flat, emb_table, w1, b1, wc, bc, bias2d, labels_flat, mask_flat)
    # 2e-4 tolerance: the kernel gathers embeddings via an exact one-hot MXU
    # matmul with f32 accumulation, but MXU multi-pass f32 rounding can differ
    # slightly from XLA's gather + dot.
    assert jnp.allclose(logits, ref_logits, atol=2e-4, rtol=2e-4)
    assert jnp.allclose(loss, ref_loss, atol=2e-4, rtol=2e-4)

    # module returns (logits, loss); logits shape (B, S, C) for token classif.
    logits = logits.reshape(B, S, C)

    # TODO(synk): the PromptForClassification / T5 generate() branches (template
    # processing, verbalizer gather, autoregressive decoding) have no clean
    # single-kernel Pallas equivalent and are not reproduced here.

    print("KERNEL_OK")
</pallas_src>

<mosaic_0001>
module attributes {stable_mosaic.version = 11 : i64} {
  func.func @kernel(%arg0: i32, %arg1: memref<72x1xi32, #tpu.memory_space<vmem>>, %arg2: memref<64x128xf32, #tpu.memory_space<vmem>>, %arg3: memref<128x128xf32, #tpu.memory_space<vmem>>, %arg4: memref<1x128xf32, #tpu.memory_space<vmem>>, %arg5: memref<128x128xf32, #tpu.memory_space<vmem>>, %arg6: memref<1x128xf32, #tpu.memory_space<vmem>>, %arg7: memref<1x128xf32, #tpu.memory_space<vmem>>, %arg8: memref<72x1xi32, #tpu.memory_space<vmem>>, %arg9: memref<72x1xf32, #tpu.memory_space<vmem>>, %arg10: memref<72x128xf32, #tpu.memory_space<vmem>>, %arg11: memref<8x128xf32, #tpu.memory_space<vmem>>) attributes {dimension_semantics = [#tpu.dimension_semantics<parallel>], iteration_bounds = array<i64: 2>, scalar_prefetch = 0 : i64, scratch_operands = 0 : i64, tpu.core_type = #tpu.core_type<tc>, window_params = [{transform_indices = @transform_0, window_bounds = array<i64: 72, 1>}, {pipeline_mode = #tpu.pipeline_mode<synchronous>, transform_indices = @transform_1, window_bounds = array<i64: 64, 128>}, {pipeline_mode = #tpu.pipeline_mode<synchronous>, transform_indices = @transform_2, window_bounds = array<i64: 128, 128>}, {pipeline_mode = #tpu.pipeline_mode<synchronous>, transform_indices = @transform_3, window_bounds = array<i64: 1, 128>}, {pipeline_mode = #tpu.pipeline_mode<synchronous>, transform_indices = @transform_4, window_bounds = array<i64: 128, 128>}, {pipeline_mode = #tpu.pipeline_mode<synchronous>, transform_indices = @transform_5, window_bounds = array<i64: 1, 128>}, {pipeline_mode = #tpu.pipeline_mode<synchronous>, transform_indices = @transform_6, window_bounds = array<i64: 1, 128>}, {transform_indices = @transform_7, window_bounds = array<i64: 72, 1>}, {transform_indices = @transform_8, window_bounds = array<i64: 72, 1>}, {transform_indices = @transform_9, window_bounds = array<i64: 72, 128>}, {transform_indices = @transform_10, window_bounds = array<i64: 8, 128>}]} {
    %0 = tpu.iota {dimensions = array<i32: 1>} : vector<72x64xi32>
    %c0 = arith.constant 0 : index
    %c0_0 = arith.constant 0 : index
    %1 = vector.load %arg1[%c0, %c0_0] : memref<72x1xi32, #tpu.memory_space<vmem>>, vector<72x1xi32>
    %2 = vector.broadcast %1 : vector<72x1xi32> to vector<72x64xi32>
    %3 = arith.cmpi eq, %0, %2 : vector<72x64xi32>
    %4 = arith.extui %3 : vector<72x64xi1> to vector<72x64xi32>
    %5 = arith.sitofp %4 : vector<72x64xi32> to vector<72x64xf32>
    %c0_1 = arith.constant 0 : index
    %c0_2 = arith.constant 0 : index
    %6 = vector.load %arg2[%c0_1, %c0_2] : memref<64x128xf32, #tpu.memory_space<vmem>>, vector<64x128xf32>
    %cst = arith.constant dense<0.000000e+00> : vector<72x128xf32>
    %7 = tpu.matmul %5, %6, %cst {dimension_numbers = #tpu.dot_dimension_numbers<[1], [0], [0], [1], [0, 0, 1, 1], [], []>} : vector<72x64xf32>, vector<64x128xf32>, vector<72x128xf32> -> vector<72x128xf32>
    %c0_3 = arith.constant 0 : index
    %c0_4 = arith.constant 0 : index
    %8 = vector.load %arg3[%c0_3, %c0_4] : memref<128x128xf32, #tpu.memory_space<vmem>>, vector<128x128xf32>
    %cst_5 = arith.constant dense<0.000000e+00> : vector<72x128xf32>
    %9 = tpu.matmul %7, %8, %cst_5 {dimension_numbers = #tpu.dot_dimension_numbers<[1], [0], [0], [1], [0, 0, 1, 1], [], []>} : vector<72x128xf32>, vector<128x128xf32>, vector<72x128xf32> -> vector<72x128xf32>
    %c0_6 = arith.constant 0 : index
    %c0_7 = arith.constant 0 : index
    %10 = vector.load %arg4[%c0_6, %c0_7] : memref<1x128xf32, #tpu.memory_space<vmem>>, vector<1x128xf32>
    %11 = vector.broadcast %10 : vector<1x128xf32> to vector<72x128xf32>
    %12 = arith.addf %9, %11 : vector<72x128xf32>
    %cst_8 = arith.constant 5.000000e-01 : f32
    %13 = vector.broadcast %cst_8 : f32 to vector<72x128xf32>
    %14 = arith.mulf %13, %12 : vector<72x128xf32>
    %cst_9 = arith.constant 4.471500e-02 : f32
    %15 = vector.broadcast %cst_9 : f32 to vector<72x128xf32>
    %16 = arith.mulf %15, %12 : vector<72x128xf32>
    %17 = arith.mulf %16, %12 : vector<72x128xf32>
    %18 = arith.mulf %17, %12 : vector<72x128xf32>
    %19 = arith.addf %12, %18 : vector<72x128xf32>
    %cst_10 = arith.constant 0.797884583 : f32
    %20 = vector.broadcast %cst_10 : f32 to vector<72x128xf32>
    %21 = arith.mulf %20, %19 : vector<72x128xf32>
    %22 = math.tanh %21 : vector<72x128xf32>
    %cst_11 = arith.constant 1.000000e+00 : f32
    %23 = vector.broadcast %cst_11 : f32 to vector<72x128xf32>
    %24 = arith.addf %23, %22 : vector<72x128xf32>
    %25 = arith.mulf %14, %24 : vector<72x128xf32>
    %c72_i32 = arith.constant 72 : i32
    %26 = arith.muli %arg0, %c72_i32 : i32
    %27 = tpu.iota {dimensions = array<i32: 0>} : vector<72x1xi32>
    %28 = vector.broadcast %26 : i32 to vector<72x1xi32>
    %29 = arith.addi %28, %27 : vector<72x1xi32>
    %c142_i32 = arith.constant 142 : i32
    %30 = vector.broadcast %c142_i32 : i32 to vector<72x1xi32>
    %31 = arith.cmpi slt, %29, %30 : vector<72x1xi32>
    %32 = arith.extui %31 : vector<72x1xi1> to vector<72x1xi32>
    %33 = arith.sitofp %32 : vector<72x1xi32> to vector<72x1xf32>
    %34 = vector.broadcast %33 : vector<72x1xf32> to vector<72x128xf32>
    %35 = arith.mulf %25, %34 : vector<72x128xf32>
    %c0_12 = arith.constant 0 : index
    %c0_13 = arith.constant 0 : index
    %36 = vector.load %arg5[%c0_12, %c0_13] : memref<128x128xf32, #tpu.memory_space<vmem>>, vector<128x128xf32>
    %cst_14 = arith.constant dense<0.000000e+00> : vector<72x128xf32>
    %37 = tpu.matmul %35, %36, %cst_14 {dimension_numbers = #tpu.dot_dimension_numbers<[1], [0], [0], [1], [0, 0, 1, 1], [], []>} : vector<72x128xf32>, vector<128x128xf32>, vector<72x128xf32> -> vector<72x128xf32>
    %c0_15 = arith.constant 0 : index
    %c0_16 = arith.constant 0 : index
    %38 = vector.load %arg6[%c0_15, %c0_16] : memref<1x128xf32, #tpu.memory_space<vmem>>, vector<1x128xf32>
    %39 = vector.broadcast %38 : vector<1x128xf32> to vector<72x128xf32>
    %40 = arith.addf %37, %39 : vector<72x128xf32>
    %c0_17 = arith.constant 0 : index
    %c0_18 = arith.constant 0 : index
    %41 = vector.load %arg10[%c0_17, %c0_18] : memref<72x128xf32, #tpu.memory_space<vmem>>, vector<72x128xf32>
    tpu.vector_store %arg10[%c0_17, %c0_18], %40 {strides = array<i32>} : memref<72x128xf32, #tpu.memory_space<vmem>>, vector<72x128xf32>,
    %c0_19 = arith.constant 0 : index
    %c0_20 = arith.constant 0 : index
    %42 = vector.load %arg7[%c0_19, %c0_20] : memref<1x128xf32, #tpu.memory_space<vmem>>, vector<1x128xf32>
    %43 = vector.broadcast %42 : vector<1x128xf32> to vector<72x128xf32>
    %44 = arith.addf %37, %43 : vector<72x128xf32>
    %cst_21 = arith.constant dense<0xFF800000> : vector<72xf32>
    %45 = vector.multi_reduction <maximumf>, %44, %cst_21 [1] : vector<72x128xf32> to vector<72xf32>
    %46 = vector.shape_cast %45 : vector<72xf32> to vector<72x1xf32>
    %47 = vector.broadcast %46 : vector<72x1xf32> to vector<72x128xf32>
    %48 = arith.subf %44, %47 : vector<72x128xf32>
    %49 = math.exp %48 : vector<72x128xf32>
    %cst_22 = arith.constant dense<0.000000e+00> : vector<72xf32>
    %50 = vector.multi_reduction <add>, %49, %cst_22 [1] : vector<72x128xf32> to vector<72xf32>
    %51 = vector.shape_cast %50 : vector<72xf32> to vector<72x1xf32>
    %52 = math.log %51 : vector<72x1xf32>
    %53 = arith.addf %46, %52 : vector<72x1xf32>
    %54 = tpu.iota {dimensions = array<i32: 1>} : vector<72x128xi32>
    %c0_23 = arith.constant 0 : index
    %c0_24 = arith.constant 0 : index
    %55 = vector.load %arg8[%c0_23, %c0_24] : memref<72x1xi32, #tpu.memory_space<vmem>>, vector<72x1xi32>
    %56 = vector.broadcast %55 : vector<72x1xi32> to vector<72x128xi32>
    %57 = arith.cmpi eq, %54, %56 : vector<72x128xi32>
    %cst_25 = arith.constant 0.000000e+00 : f32
    %58 = vector.broadcast %cst_25 : f32 to vector<72x128xf32>
    %59 = arith.select %57, %44, %58 : vector<72x128xi1>, vector<72x128xf32>
    %cst_26 = arith.constant dense<0.000000e+00> : vector<72xf32>
    %60 = vector.multi_reduction <add>, %59, %cst_26 [1] : vector<72x128xf32> to vector<72xf32>
    %61 = vector.shape_cast %60 : vector<72xf32> to vector<72x1xf32>
    %c0_27 = arith.constant 0 : index
    %c0_28 = arith.constant 0 : index
    %62 = vector.load %arg9[%c0_27, %c0_28] : memref<72x1xf32, #tpu.memory_space<vmem>>, vector<72x1xf32>
    %cst_29 = arith.constant 0.000000e+00 : f32
    %63 = vector.broadcast %cst_29 : f32 to vector<72x1xf32>
    %64 = arith.select %31, %62, %63 : vector<72x1xi1>, vector<72x1xf32>
    %65 = arith.subf %53, %61 : vector<72x1xf32>
    %66 = arith.mulf %65, %64 : vector<72x1xf32>
    %cst_30 = arith.constant dense<0.000000e+00> : vector<1xf32>
    %67 = vector.multi_reduction <add>, %66, %cst_30 [0] : vector<72x1xf32> to vector<1xf32>
    %68 = vector.shape_cast %67 : vector<1xf32> to vector<1x1xf32>
    %69 = arith.mulf %35, %35 : vector<72x128xf32>
    %cst_31 = arith.constant dense<0.000000e+00> : vector<72xf32>
    %70 = vector.multi_reduction <add>, %69, %cst_31 [1] : vector<72x128xf32> to vector<72xf32>
    %71 = vector.shape_cast %70 : vector<72xf32> to vector<72x1xf32>
    %cst_32 = arith.constant dense<0.000000e+00> : vector<1xf32>
    %72 = vector.multi_reduction <add>, %71, %cst_32 [0] : vector<72x1xf32> to vector<1xf32>
    %73 = vector.shape_cast %72 : vector<1xf32> to vector<1x1xf32>
    %74 = tpu.iota {dimensions = array<i32: 1>} : vector<8x128xi32>
    %c0_i32 = arith.constant 0 : i32
    %75 = vector.broadcast %c0_i32 : i32 to vector<8x128xi32>
    %76 = arith.cmpi eq, %74, %75 : vector<8x128xi32>
    %77 = vector.shape_cast %68 : vector<1x1xf32> to vector<1x1xf32>
    %78 = vector.broadcast %77 : vector<1x1xf32> to vector<8x128xf32>
    %c1_i32 = arith.constant 1 : i32
    %79 = vector.broadcast %c1_i32 : i32 to vector<8x128xi32>
    %80 = arith.cmpi eq, %74, %79 : vector<8x128xi32>
    %81 = vector.shape_cast %73 : vector<1x1xf32> to vector<1x1xf32>
    %82 = vector.broadcast %81 : vector<1x1xf32> to vector<8x128xf32>
    %cst_33 = arith.constant 0.000000e+00 : f32
    %83 = vector.broadcast %cst_33 : f32 to vector<8x128xf32>
    %84 = arith.select %80, %82, %83 : vector<8x128xi1>, vector<8x128xf32>
    %85 = arith.select %76, %78, %84 : vector<8x128xi1>, vector<8x128xf32>
    %c0_34 = arith.constant 0 : index
    %c0_35 = arith.constant 0 : index
    %86 = vector.load %arg11[%c0_34, %c0_35] : memref<8x128xf32, #tpu.memory_space<vmem>>, vector<8x128xf32>
    tpu.vector_store %arg11[%c0_34, %c0_35], %85 {strides = array<i32>} : memref<8x128xf32, #tpu.memory_space<vmem>>, vector<8x128xf32>,
    return
  }
  func.func @transform_0(%arg0: i32) -> (i32, i32) {
    %c0_i32 = arith.constant 0 : i32
    %c0_i32_0 = arith.constant 0 : i32
    return %arg0, %c0_i32 : i32, i32
  }
  func.func @transform_1(%arg0: i32) -> (i32, i32) {
    %c0_i32 = arith.constant 0 : i32
    %c0_i32_0 = arith.constant 0 : i32
    %c0_i32_1 = arith.constant 0 : i32
    return %c0_i32, %c0_i32_0 : i32, i32
  }
  func.func @transform_2(%arg0: i32) -> (i32, i32) {
    %c0_i32 = arith.constant 0 : i32
    %c0_i32_0 = arith.constant 0 : i32
    %c0_i32_1 = arith.constant 0 : i32
    return %c0_i32, %c0_i32_0 : i32, i32
  }
  func.func @transform_3(%arg0: i32) -> (i32, i32) {
    %c0_i32 = arith.constant 0 : i32
    %c0_i32_0 = arith.constant 0 : i32
    %c0_i32_1 = arith.constant 0 : i32
    return %c0_i32, %c0_i32_0 : i32, i32
  }
  func.func @transform_4(%arg0: i32) -> (i32, i32) {
    %c0_i32 = arith.constant 0 : i32
    %c0_i32_0 = arith.constant 0 : i32
    %c0_i32_1 = arith.constant 0 : i32
    return %c0_i32, %c0_i32_0 : i32, i32
  }
  func.func @transform_5(%arg0: i32) -> (i32, i32) {
    %c0_i32 = arith.constant 0 : i32
    %c0_i32_0 = arith.constant 0 : i32
    %c0_i32_1 = arith.constant 0 : i32
    return %c0_i32, %c0_i32_0 : i32, i32
  }
  func.func @transform_6(%arg0: i32) -> (i32, i32) {
    %c0_i32 = arith.constant 0 : i32
    %c0_i32_0 = arith.constant 0 : i32
    %c0_i32_1 = arith.constant 0 : i32
    return %c0_i32, %c0_i32_0 : i32, i32
  }
  func.func @transform_7(%arg0: i32) -> (i32, i32) {
    %c0_i32 = arith.constant 0 : i32
    %c0_i32_0 = arith.constant 0 : i32
    return %arg0, %c0_i32 : i32, i32
  }
  func.func @transform_8(%arg0: i32) -> (i32, i32) {
    %c0_i32 = arith.constant 0 : i32
    %c0_i32_0 = arith.constant 0 : i32
    return %arg0, %c0_i32 : i32, i32
  }
  func.func @transform_9(%arg0: i32) -> (i32, i32) {
    %c0_i32 = arith.constant 0 : i32
    %c0_i32_0 = arith.constant 0 : i32
    return %arg0, %c0_i32 : i32, i32
  }
  func.func @transform_10(%arg0: i32) -> (i32, i32) {
    %c0_i32 = arith.constant 0 : i32
    %c0_i32_0 = arith.constant 0 : i32
    return %arg0, %c0_i32 : i32, i32
  }
}

</mosaic_0001>

<bundles_post_ra>
// kernel: tpu_custom_call.1
= control target key start
LH: loop header
LB: loop body
LE: loop exit
PB: predicated region body
PF: predicated region fallthrough
CT: control target
= control target key end

     0   :  { %s2862_s0 = inlined_call_operand.vmem [shape: s32[142,1], index: 0, kind: input, shape index: {}]   ;;  %s2863_s1 = inlined_call_operand.vmem [shape: f32[64,128], index: 1, kind: input, shape index: {}]   ;;  %s2864_s2 = inlined_call_operand.vmem [shape: f32[128,128], index: 2, kind: input, shape index: {}]   ;;  %s2865_s3 = inlined_call_operand.vmem [shape: f32[1,128], index: 3, kind: input, shape index: {}]   ;;  %s2866_s4 = inlined_call_operand.vmem [shape: f32[128,128], index: 4, kind: input, shape index: {}]   ;;  %s2867_s5 = inlined_call_operand.vmem [shape: f32[1,128], index: 5, kind: input, shape index: {}]   ;;  %s2868_s6 = inlined_call_operand.vmem [shape: f32[1,128], index: 6, kind: input, shape index: {}]   ;;  %s2869_s7 = inlined_call_operand.vmem [shape: s32[142,1], index: 7, kind: input, shape index: {}]   ;;  %s2870_s8 = inlined_call_operand.vmem [shape: f32[142,1], index: 8, kind: input, shape index: {}]   ;;  %s2871_s9 = inlined_call_operand.hbm [shape: f32[142,128], index: 9, kind: output, shape index: {0}]   ;;  %s2872_s10 = inlined_call_operand.hbm [shape: f32[16,128], index: 10, kind: output, shape index: {1}]  }
   0x1   :  { %2873 = sst [smem:[#allocation8_spill]] %s2862_s0 }
   0x2   :  { %16 = vsyncpa [#allocation3], 0 }
   0x3   :  { %18 = vsyncpa [#allocation3 + $0x1], 0 }
   0x4   :  { %19 = vsyncpa [#allocation5], 0 }
   0x5   :  { %21 = vsyncpa [#allocation5 + $0x1], 0  ;;  %s2102_s13 = smov 0   ;;  %s2104_s14 = smov 0  }
   0x6   :  { %s2106_s15 = smov 0   ;;  %s2108_s16 = smov 0  }
   0x7 LB: > { %s2123_s17 = sadd.s32 4294967295, %s2037_s16   ;;  %s1488_s18 = sadd.s32 4294967294, %s2037_s16   ;;  %s2037_s16 = sphi %s2108_s16, %s2881_s16   ;;  %s2033_s15 = sphi %s2106_s15, %s2880_s15   ;;  %s2029_s14 = sphi %s2104_s14, %s2879_s14   ;;  %s2025_s13 = sphi %s2102_s13, %s2878_s13  }
   0x8   : > { %s2127_s19 = sadd.s32 1, %s2037_s16   ;;  %s238_s20 = sadd.s32 1, %s2033_s15 }
   0x9   : > { %s235_s21 = ssub.s32 %s2037_s16, %s2127_s19  ;;  %p248_p0 = scmp.ne.s32.totalorder %s2033_s15, %s2029_s14 }
   0xa   : > { %p236_p1 = scmp.eq.s32.totalorder %s235_s21, 0  ;;  %p249_p2 = scmp.eq.s32.totalorder %s2123_s17, 1 }
   0xb   : > { %p254_p3 = scmp.ne.s32.totalorder %s2029_s14, %s2025_s13  ;;  %p255_p4 = scmp.eq.s32.totalorder %s1488_s18, 1 }
   0xc   : > { %s2138_s22 = scalar_select %p236_p1, %s2033_s15, %s238_s20  }
   0xd   : > { %p2140_p5 = por %p249_p2, %p248_p0  ;;  %p2144_p6 = por %p255_p4, %p254_p3 }
   0xe   : > { %p1491_p7 = scmp.ge.s32.totalorder %s2037_s16, 1  ;;  %p344_p8 = scmp.lt.s32.totalorder %s2037_s16, 3 }
  0x10   : > { %p345_p9 = pnand %p1491_p7, %p344_p8 }
  0x11   : > { %s397_s25 = smul.u32 (!%p345_p9), 9, %s2123_s17  ;;  %v481_v0 = vld [vmem:[%s2863_s1] sm:$0xff] (!%p345_p9)  ;;  %v482_v1 = vld [vmem:[%s2863_s1 + $0x8] sm:$0xff] (!%p345_p9)  ;;  %v483_v2 = vld [vmem:[%s2863_s1 + $0x10] sm:$0xff] (!%p345_p9)  ;;  %v2039_v3 = vmov (!%p345_p9), 0   ;;  %v2040_v6 = vmov (!%p345_p9), 0.0|0.0   ;;  %v416_v55 = vlaneseq (!%p345_p9) }
  0x12   : > { %348 = sbr.rel (%p345_p9) target bundleno = 1337 (0x539), region = 56  ;;  %1888 = vset.pattern.permute.xlu1 (!%p345_p9), %v2039_v3  ;;  %1887 = vset.pattern.permute.xlu0 (!%p345_p9), %v2039_v3  ;;  %v1761_v4 = vpack.c.bf16 (!%p345_p9), %v482_v1, %v481_v0  ;;  %v484_v5 = vld [vmem:[%s2863_s1 + $0x18] sm:$0xff] (!%p345_p9)  ;;  %v485_v8 = vld [vmem:[%s2863_s1 + $0x20] sm:$0xff] (!%p345_p9)  ;;  %v486_v9 = vld [vmem:[%s2863_s1 + $0x28] sm:$0xff] (!%p345_p9)  ;;  %s2876_s0 = sld [smem:[#allocation8_spill]] (!%p345_p9)  ;;  %vm2041_vm0 = vmmov (!%p345_p9), 0  }
  0x13   : > { %p398_p10 = scmp.lt.s32.totalorder (!%p345_p9), %s397_s25, 17  ;;  %1760 = vmatprep.subr.bf16.mxu0 (!%p345_p9), %v2040_v6  ;;  %1772 = vmatprep.subr.bf16.mxu1 (!%p345_p9), %v2040_v6  ;;  %v1764_v7 = vpack.c.bf16 (!%p345_p9), %v484_v5, %v483_v2  ;;  %v1767_v10 = vpack.c.bf16 (!%p345_p9), %v486_v9, %v485_v8  ;;  %v487_v11 = vld [vmem:[%s2863_s1 + $0x30] sm:$0xff] (!%p345_p9)  ;;  %v488_v14 = vld [vmem:[%s2863_s1 + $0x38] sm:$0xff] (!%p345_p9)  ;;  %v2042_v17 = vmov (!%p345_p9), 0.0   ;;  %v627_v31 = vld [vmem:[%s2864_s2] sm:$0xff] (!%p345_p9)  ;;  %v2272_v56 = vand.u32 (!%p345_p9), 127, %v416_v55 }
  0x14   : > { %1762 = vmatpush3.bf16.msra.mxu0 (!%p345_p9), %v1761_v4  ;;  %1615 = vmatprep.mubr.msk.f32.mxu0 (!%p345_p9), %vm2041_vm0, %v2042_v17  ;;  %v1770_v18 = vpack.c.bf16 (!%p345_p9), %v488_v14, %v487_v11  ;;  %v628_v32 = vld [vmem:[%s2864_s2 + $0x8] sm:$0xff] (!%p345_p9)  ;;  %v629_v33 = vld [vmem:[%s2864_s2 + $0x10] sm:$0xff] (!%p345_p9)  ;;  %v630_v35 = vld [vmem:[%s2864_s2 + $0x18] sm:$0xff] (!%p345_p9)  ;;  %vm489_vm1 = vcmask (!%p345_p9), 523264   ;;  %s2589_s18 = sand.u32 (!%p345_p9), 1, %s2029_s14   ;;  %s2043_s12 = smov (!%p345_p9), [#allocation2]  }
  0x15   : > { %1763 = vmatprep.subr.bf16.mxu0 (!%p345_p9), %v2040_v6  ;;  %1674 = vmatprep.mubr.msk.f32.mxu1 (!%p345_p9), %vm2041_vm0, %v2042_v17  ;;  %v1773_v34 = vpack.c.bf16 (!%p345_p9), %v628_v32, %v627_v31  ;;  %v1776_v36 = vpack.c.bf16 (!%p345_p9), %v630_v35, %v629_v33  ;;  %v631_v37 = vld [vmem:[%s2864_s2 + $0x20] sm:$0xff] (!%p345_p9)  ;;  %v632_v38 = vld [vmem:[%s2864_s2 + $0x28] sm:$0xff] (!%p345_p9)  ;;  %v633_v40 = vld [vmem:[%s2864_s2 + $0x30] sm:$0xff] (!%p345_p9) }
  0x16   : > { %v1779_v39 = vpack.c.bf16 (!%p345_p9), %v632_v38, %v631_v37  ;;  %v634_v41 = vld [vmem:[%s2864_s2 + $0x38] sm:$0xff] (!%p345_p9)  ;;  %v635_v43 = vld [vmem:[%s2864_s2 + $0x40] sm:$0xff] (!%p345_p9)  ;;  %v636_v44 = vld [vmem:[%s2864_s2 + $0x48] sm:$0xff] (!%p345_p9) }
  0x17   : > { %1774 = vmatpush3.bf16.msra.mxu1 (!%p345_p9), %v1773_v34  ;;  %v1782_v42 = vpack.c.bf16 (!%p345_p9), %v634_v41, %v633_v40  ;;  %v1785_v45 = vpack.c.bf16 (!%p345_p9), %v636_v44, %v635_v43  ;;  %v637_v46 = vld [vmem:[%s2864_s2 + $0x50] sm:$0xff] (!%p345_p9)  ;;  %v638_v47 = vld [vmem:[%s2864_s2 + $0x58] sm:$0xff] (!%p345_p9)  ;;  %v639_v49 = vld [vmem:[%s2864_s2 + $0x60] sm:$0xff] (!%p345_p9) }
  0x18   : > { %1765 = vmatpush3.bf16.msra.mxu0 (!%p345_p9), %v1764_v7  ;;  %1775 = vmatprep.subr.bf16.mxu1 (!%p345_p9), %v2040_v6  ;;  %v1788_v48 = vpack.c.bf16 (!%p345_p9), %v638_v47, %v637_v46  ;;  %v640_v50 = vld [vmem:[%s2864_s2 + $0x68] sm:$0xff] (!%p345_p9)  ;;  %v641_v52 = vld [vmem:[%s2864_s2 + $0x70] sm:$0xff] (!%p345_p9)  ;;  %v642_v53 = vld [vmem:[%s2864_s2 + $0x78] sm:$0xff] (!%p345_p9) }
  0x19   : > { %s2883_s25 = smov (!%p398_p10, %s397_s25), 17  ;;  %1766 = vmatprep.subr.bf16.mxu0 %v2040_v6  ;;  %v1791_v51 = vpack.c.bf16 %v640_v50, %v639_v49  ;;  %v1794_v54 = vpack.c.bf16 %v642_v53, %v641_v52  ;;  %v900_v34 = vld [vmem:[%s2866_s4 + $0x10] sm:$0xff]  ;;  %v901_v35 = vld [vmem:[%s2866_s4 + $0x18] sm:$0xff]  ;;  %v902_v37 = vld [vmem:[%s2866_s4 + $0x20] sm:$0xff] }
  0x1a   : > { %s2172_s28 = sshll.u32 %s2883_s25, 3  ;;  %v903_v38 = vld [vmem:[%s2866_s4 + $0x28] sm:$0xff]  ;;  %v904_v40 = vld [vmem:[%s2866_s4 + $0x30] sm:$0xff]  ;;  %v905_v41 = vld [vmem:[%s2866_s4 + $0x38] sm:$0xff]  ;;  %s1836_s25 = smul.u32 72, %s2589_s18 }
  0x1b   : > { %s2178_s11 = scalar_lea.vmem %s2876_s0, %s2172_s28  ;;  %s2205_s27 = scalar_lea.vmem %s2869_s7, %s2172_s28  ;;  %1777 = vmatpush3.bf16.msra.mxu1 %v1776_v36  ;;  %v1800_v36 = vpack.c.bf16 %v901_v35, %v900_v34  ;;  %v906_v43 = vld [vmem:[%s2866_s4 + $0x40] sm:$0xff]  ;;  %v907_v44 = vld [vmem:[%s2866_s4 + $0x48] sm:$0xff]  ;;  %v908_v46 = vld [vmem:[%s2866_s4 + $0x50] sm:$0xff] }
  0x1c   : > { %v420_v12 = vld [vmem:[%s2178_s11 + $0x10] sm:$0xff]  ;;  %v418_v13 = vld [vmem:[%s2178_s11] sm:$0xff]  ;;  %v421_v15 = vld [vmem:[%s2178_s11 + $0x18] sm:$0xff]  ;;  %1768 = vmatpush3.bf16.msra.mxu0 %v1767_v10  ;;  %1778 = vmatprep.subr.bf16.mxu1 %v2040_v6  ;;  %s2600_s30 = scalar_lea.vmem [#allocation2], %s1836_s25 }
  0x1d   : > { %434 = vperm.xlu1 %1888, %v420_v12   ;;  %428 = vperm.xlu0 %1887, %v418_v13   ;;  %v419_v16 = vld [vmem:[%s2178_s11 + $0x8] sm:$0xff]  ;;  %v422_v20 = vld [vmem:[%s2178_s11 + $0x20] sm:$0xff]  ;;  %v425_v21 = vld [vmem:[%s2178_s11 + $0x38] sm:$0xff]  ;;  %s1357_s25 = sshll.u32 %s2600_s30, 4  ;;  %s2786_s25 = int_to_ptr.vmem [resolvable:$true] %s1357_s25 }
  0x1e   : > { %1769 = vmatprep.subr.bf16.mxu0 %v2040_v6  ;;  %v423_v19 = vld [vmem:[%s2178_s11 + $0x28] sm:$0xff]  ;;  %v424_v22 = vld [vmem:[%s2178_s11 + $0x30] sm:$0xff]  ;;  %v1155_v23 = vld [vmem:[%s2205_s27] sm:$0xff] }
  0x1f   : > { %v426_v24 = vld [vmem:[%s2178_s11 + $0x40] sm:$0xff]  ;;  %v1157_v25 = vld [vmem:[%s2205_s27 + $0x10] sm:$0xff]  ;;  %v1156_v26 = vld [vmem:[%s2205_s27 + $0x8] sm:$0xff]  ;;  %1780 = vmatpush3.bf16.msra.mxu1 %v1779_v39  ;;  %v1803_v39 = vpack.c.bf16 %v903_v38, %v902_v37  ;;  %s841_s11 = smul.u32 72, %s2123_s17 }
  0x20   : > { %1771 = vmatpush3.bf16.msra.mxu0 %v1770_v18  ;;  %v1158_v27 = vld [vmem:[%s2205_s27 + $0x18] sm:$0xff]  ;;  %v1159_v28 = vld [vmem:[%s2205_s27 + $0x20] sm:$0xff]  ;;  %v1160_v29 = vld [vmem:[%s2205_s27 + $0x28] sm:$0xff]  ;;  %1781 = vmatprep.subr.bf16.mxu1 %v2040_v6 }
  0x21   : > { %437 = vperm.xlu1 %1888, %v421_v15   ;;  %431 = vperm.xlu0 %1887, %v419_v16   ;;  %v1161_v30 = vld [vmem:[%s2205_s27 + $0x30] sm:$0xff]  ;;  %v898_v12 = vld [vmem:[%s2866_s4] sm:$0xff]  ;;  %v899_v13 = vld [vmem:[%s2866_s4 + $0x8] sm:$0xff] }
  0x22   : > { %1796 = vmatprep.subr.bf16.mxu0 %v2040_v6  ;;  %v1797_v14 = vpack.c.bf16 %v899_v13, %v898_v12  ;;  %v909_v47 = vld [vmem:[%s2866_s4 + $0x58] sm:$0xff]  ;;  %v910_v49 = vld [vmem:[%s2866_s4 + $0x60] sm:$0xff]  ;;  %v911_v50 = vld [vmem:[%s2866_s4 + $0x68] sm:$0xff]  ;;  %v2417_v13 = vshrl.u32 %v416_v55, 7 }
  0x23   : > { %1783 = vmatpush3.bf16.msra.mxu1 %v1782_v42  ;;  %v1806_v42 = vpack.c.bf16 %v905_v41, %v904_v40  ;;  %v912_v52 = vld [vmem:[%s2866_s4 + $0x70] sm:$0xff]  ;;  %v913_v53 = vld [vmem:[%s2866_s4 + $0x78] sm:$0xff] }
  0x24   : > { %1784 = vmatprep.subr.bf16.mxu1 %v2040_v6  ;;  %v845_v34 = vadd.s32 16, %v2417_v13 }
  0x25   : > { %443 = vperm.xlu1 %1888, %v423_v19   ;;  %440 = vperm.xlu0 %1887, %v422_v20  }
  0x27   : > { %1786 = vmatpush3.bf16.msra.mxu1 %v1785_v45  ;;  %v1809_v45 = vpack.c.bf16 %v907_v44, %v906_v43 }
  0x28   : > { %1787 = vmatprep.subr.bf16.mxu1 %v2040_v6 }
  0x29   : > { %449 = vperm.xlu1 %1888, %v425_v21   ;;  %446 = vperm.xlu0 %1887, %v424_v22  }
  0x2b   : > { %1789 = vmatpush3.bf16.msra.mxu1 %v1788_v48  ;;  %v1812_v48 = vpack.c.bf16 %v909_v47, %v908_v46 }
  0x2c   : > { %1790 = vmatprep.subr.bf16.mxu1 %v2040_v6 }
  0x2d   : > { %1165 = vperm.xlu1 %1888, %v1155_v23   ;;  %452 = vperm.xlu0 %1887, %v426_v24  }
  0x2f   : > { %1792 = vmatpush3.bf16.msra.mxu1 %v1791_v51  ;;  %v1815_v51 = vpack.c.bf16 %v911_v50, %v910_v49 }
  0x30   : > { %1793 = vmatprep.subr.bf16.mxu1 %v2040_v6 }
  0x31   : > { %1171 = vperm.xlu1 %1888, %v1157_v25   ;;  %1168 = vperm.xlu0 %1887, %v1156_v26  }
  0x33   : > { %1795 = vmatpush3.bf16.msra.mxu1 %v1794_v54  ;;  %v1818_v54 = vpack.c.bf16 %v913_v53, %v912_v52  ;;  %v846_v53 = vadd.s32 24, %v2417_v13 }
  0x34   : > { %1820 = vmatprep.subr.bf16.mxu1 %v2040_v6 }
  0x35   : > { %1174 = vperm.xlu1 %1888, %v1158_v27   ;;  %1177 = vperm.xlu0 %1887, %v1159_v28  }
  0x39   : > { %1180 = vperm.xlu1 %1888, %v1160_v29   ;;  %1183 = vperm.xlu0 %1887, %v1161_v30  }
  0x9c   : > { %v429_v57 = vpop.permute.xlu0 %428  ;;  %v435_v59 = vpop.permute.xlu1 %434 }
  0x9d   : > { %vm454_vm2 = vcmp.eq.s32.totalorder %v2272_v56, %v429_v57  ;;  %vm456_vm3 = vcmp.eq.s32.totalorder %v2272_v56, %v435_v59  ;;  %v2402_v57 = vld [vmem:[%s2865_s3] ss:$0 sm:$0xff] }
  0x9e   : > { %v1496_v58 = vsel %vm454_vm2, 1.0, %v2042_v17  ;;  %v1498_v62 = vsel %vm456_vm3, 1.0, %v2042_v17 }
  0x9f   : > { %1616 = vmatmul.mubr.msk.f32.vlgmr.msra.gmra.mrb[0].mxu0 %vm489_vm1, %v1496_v58 }
  0xa0   : > { %v432_v60 = vpop.permute.xlu0 %431  ;;  %1618 = vmatprep.mubr.msk.f32.mxu0 %vm2041_vm0, %v2042_v17  ;;  %v438_v63 = vpop.permute.xlu1 %437  ;;  %1798 = vmatpush3.bf16.msra.mxu0 %v1797_v14 }
  0xa1   : > { %vm455_vm4 = vcmp.eq.s32.totalorder %v2272_v56, %v432_v60  ;;  %vm457_vm5 = vcmp.eq.s32.totalorder %v2272_v56, %v438_v63  ;;  %1799 = vmatprep.subr.bf16.mxu0 %v2040_v6 }
  0xa2   : > { %v1497_v61 = vsel %vm455_vm4, 1.0, %v2042_v17  ;;  %v1499_v1 = vsel %vm457_vm5, 1.0, %v2042_v17 }
  0xa3   : > { %1619 = vmatmul.mubr.msk.f32.gmra.mrb[2].mxu0 %vm489_vm1, %v1497_v61 }
  0xa4   : > { %1621 = vmatprep.mubr.msk.f32.mxu0 %vm2041_vm0, %v2042_v17  ;;  %v441_v0 = vpop.permute.xlu0 %440  ;;  %v444_v2 = vpop.permute.xlu1 %443  ;;  %1801 = vmatpush3.bf16.msra.mxu0 %v1800_v36 }
  0xa5   : > { %vm458_vm6 = vcmp.eq.s32.totalorder %v2272_v56, %v441_v0  ;;  %vm459_vm7 = vcmp.eq.s32.totalorder %v2272_v56, %v444_v2  ;;  %1802 = vmatprep.subr.bf16.mxu0 %v2040_v6 }
  0xa6   : > { %v1500_v3 = vsel %vm458_vm6, 1.0, %v2042_v17  ;;  %v1501_v5 = vsel %vm459_vm7, 1.0, %v2042_v17 }
  0xa7   : > { %1622 = vmatmul.mubr.msk.f32.gmra.mrb[4].mxu0 %vm489_vm1, %v1498_v62 }
  0xa8   : > { %1624 = vmatprep.mubr.msk.f32.mxu0 %vm2041_vm0, %v2042_v17  ;;  %v447_v4 = vpop.permute.xlu0 %446  ;;  %v450_v7 = vpop.permute.xlu1 %449  ;;  %1804 = vmatpush3.bf16.msra.mxu0 %v1803_v39 }
  0xa9   : > { %vm460_vm8 = vcmp.eq.s32.totalorder %v2272_v56, %v447_v4  ;;  %vm461_vm9 = vcmp.eq.s32.totalorder %v2272_v56, %v450_v7  ;;  %1805 = vmatprep.subr.bf16.mxu0 %v2040_v6 }
  0xaa   : > { %v1502_v8 = vsel %vm460_vm8, 1.0, %v2042_v17  ;;  %v1503_v10 = vsel %vm461_vm9, 1.0, %v2042_v17 }
  0xab   : > { %1625 = vmatmul.mubr.msk.f32.gmra.mrb[6].mxu0 %vm489_vm1, %v1499_v1 }
  0xac   : > { %1627 = vmatprep.mubr.msk.f32.mxu0 %vm2041_vm0, %v2042_v17  ;;  %v453_v9 = vpop.permute.xlu0 %452  ;;  %1807 = vmatpush3.bf16.msra.mxu0 %v1806_v42 }
  0xad   : > { %vm462_vm10 = vcmp.eq.s32.totalorder %v2272_v56, %v453_v9  ;;  %1808 = vmatprep.subr.bf16.mxu0 %v2040_v6 }
  0xae   : > { %v1504_v11 = vsel %vm462_vm10, 1.0, %v2042_v17 }
  0xaf   : > { %1628 = vmatmul.mubr.msk.f32.gmra.mrb[8].mxu0 %vm489_vm1, %v1500_v3 }
  0xb0   : > { %1630 = vmatprep.mubr.msk.f32.mxu0 %vm2041_vm0, %v2042_v17  ;;  %1810 = vmatpush3.bf16.msra.mxu0 %v1809_v45 }
  0xb1   : > { %1811 = vmatprep.subr.bf16.mxu0 %v2040_v6 }
  0xb3   : > { %1631 = vmatmul.mubr.msk.f32.gmra.mrb[10].mxu0 %vm489_vm1, %v1501_v5 }
  0xb4   : > { %1633 = vmatprep.mubr.msk.f32.mxu0 %vm2041_vm0, %v2042_v17  ;;  %1813 = vmatpush3.bf16.msra.mxu0 %v1812_v48 }
  0xb5   : > { %1814 = vmatprep.subr.bf16.mxu0 %v2040_v6 }
  0xb7   : > { %1634 = vmatmul.mubr.msk.f32.gmra.mrb[12].mxu0 %vm489_vm1, %v1502_v8 }
  0xb8   : > { %1636 = vmatprep.mubr.msk.f32.mxu0 %vm2041_vm0, %v2042_v17  ;;  %1816 = vmatpush3.bf16.msra.mxu0 %v1815_v51 }
  0xb9   : > { %1817 = vmatprep.subr.bf16.mxu0 %v2040_v6 }
  0xbb   : > { %1637 = vmatmul.mubr.msk.f32.gmra.mrb[14].mxu0 %vm489_vm1, %v1503_v10 }
  0xbc   : > { %1639 = vmatprep.mubr.msk.f32.mxu0 %vm2041_vm0, %v2042_v17  ;;  %1819 = vmatpush3.bf16.msra.mxu0 %v1818_v54 }
  0xbf   : > { %1640 = vmatmul.mubr.msk.f32.gmra.mrb[16].mxu0 %vm489_vm1, %v1504_v11 }
  0xc0   : > { %1733 = vmatprep.mubr.msk.f32.mxu0 %vm2041_vm0, %v2042_v17 }
 0x172   : > { %v583_v15 = vpop.f32.mrb[0].mxu0 }
 0x173   : > { %v1617_v16 = vpop.f32.mrb[1].mxu0  ;;  %1675 = vmatmul.mubr.f32.vlgmr.msra.gmra.mrb[0].mxu1 %v583_v15 }
 0x174   : > { %1677 = vmatprep.mubr.msk.f32.mxu1 %vm2041_vm0, %v2042_v17  ;;  %1828 = vmatpush3.bf16.msra.mxu1 %v1797_v14  ;;  %v2419_v14 = vstv %s841_s11  ;;  %s2732_s11 = scalar_lea.vmem %s2870_s8, %s2172_s28  ;;  %s1531_s28 = smul.u32 1152, %s2123_s17 }
 0x175   : > { %1821 = vmatprep.subr.bf16.mxu1 %v2040_v6  ;;  %v2430_v55 = vadd.s32 %v2419_v14, %v2417_v13  ;;  %v2457_v47 = vadd.s32 %v2419_v14, %v845_v34 }
 0x176   : > { %v588_v18 = vpop.f32.mrb[2].mxu0  ;;  %s2784_s26 = scalar_lea.hbm %s2871_s9, %s1531_s28 }
 0x177   : > { %v1620_v19 = vpop.f32.mrb[3].mxu0  ;;  %1678 = vmatmul.mubr.f32.gmra.mrb[2].mxu1 %v588_v18  ;;  %vm862_vm11 = vcmp.lt.s32.totalorder %v2430_v55, 142  ;;  %vm864_vm13 = vcmp.lt.s32.totalorder %v2457_v47, 142  ;;  %v1231_v55 = vld [vmem:[%s2732_s11 + $0x20] sm:$0xff] }
 0x178   : > { %1680 = vmatprep.mubr.msk.f32.mxu1 %vm2041_vm0, %v2042_v17  ;;  %1829 = vmatpush3.bf16.msra.mxu1 %v1800_v36 }
 0x179   : > { %1822 = vmatprep.subr.bf16.mxu1 %v2040_v6 }
 0x17a   : > { %v593_v20 = vpop.f32.mrb[4].mxu0 }
 0x17b   : > { %v1623_v21 = vpop.f32.mrb[5].mxu0  ;;  %1681 = vmatmul.mubr.f32.gmra.mrb[4].mxu1 %v593_v20 }
 0x17c   : > { %1683 = vmatprep.mubr.msk.f32.mxu1 %vm2041_vm0, %v2042_v17  ;;  %1830 = vmatpush3.bf16.msra.mxu1 %v1803_v39 }
 0x17d   : > { %1823 = vmatprep.subr.bf16.mxu1 %v2040_v6 }
 0x17e   : > { %v598_v22 = vpop.f32.mrb[6].mxu0 }
 0x17f   : > { %v1626_v23 = vpop.f32.mrb[7].mxu0  ;;  %1684 = vmatmul.mubr.f32.gmra.mrb[6].mxu1 %v598_v22 }
 0x180   : > { %1686 = vmatprep.mubr.msk.f32.mxu1 %vm2041_vm0, %v2042_v17  ;;  %1831 = vmatpush3.bf16.msra.mxu1 %v1806_v42  ;;  %v1515_v42 = vsel %vm862_vm11, 1.0, %v2042_v17 }
 0x181   : > { %1824 = vmatprep.subr.bf16.mxu1 %v2040_v6 }
 0x182   : > { %v603_v24 = vpop.f32.mrb[8].mxu0 }
 0x183   : > { %v1629_v25 = vpop.f32.mrb[9].mxu0  ;;  %1687 = vmatmul.mubr.f32.gmra.mrb[8].mxu1 %v603_v24  ;;  %v844_v24 = vadd.s32 8, %v2417_v13 }
 0x184   : > { %1689 = vmatprep.mubr.msk.f32.mxu1 %vm2041_vm0, %v2042_v17  ;;  %1832 = vmatpush3.bf16.msra.mxu1 %v1809_v45 }
 0x185   : > { %1825 = vmatprep.subr.bf16.mxu1 %v2040_v6 }
 0x186   : > { %v608_v26 = vpop.f32.mrb[10].mxu0 }
 0x187   : > { %v1632_v27 = vpop.f32.mrb[11].mxu0  ;;  %1690 = vmatmul.mubr.f32.gmra.mrb[10].mxu1 %v608_v26 }
 0x188   : > { %1692 = vmatprep.mubr.msk.f32.mxu1 %vm2041_vm0, %v2042_v17  ;;  %1833 = vmatpush3.bf16.msra.mxu1 %v1812_v48 }
 0x189   : > { %1826 = vmatprep.subr.bf16.mxu1 %v2040_v6 }
 0x18a   : > { %v613_v28 = vpop.f32.mrb[12].mxu0 }
 0x18b   : > { %v1635_v29 = vpop.f32.mrb[13].mxu0  ;;  %1693 = vmatmul.mubr.f32.gmra.mrb[12].mxu1 %v613_v28 }
 0x18c   : > { %1695 = vmatprep.mubr.msk.f32.mxu1 %vm2041_vm0, %v2042_v17  ;;  %1834 = vmatpush3.bf16.msra.mxu1 %v1815_v51 }
 0x18d   : > { %1827 = vmatprep.subr.bf16.mxu1 %v2040_v6 }
 0x18e   : > { %v618_v30 = vpop.f32.mrb[14].mxu0 }
 0x18f   : > { %v1638_v31 = vpop.f32.mrb[15].mxu0  ;;  %1696 = vmatmul.mubr.f32.gmra.mrb[14].mxu1 %v618_v30 }
 0x190   : > { %1698 = vmatprep.mubr.msk.f32.mxu1 %vm2041_vm0, %v2042_v17  ;;  %1835 = vmatpush3.bf16.msra.mxu1 %v1818_v54 }
 0x192   : > { %v623_v32 = vpop.f32.mrb[16].mxu0 }
 0x193   : > { %v1641_v33 = vpop.f32.mrb[17].mxu0  ;;  %1699 = vmatmul.mubr.f32.gmra.mrb[16].mxu1 %v623_v32 }
 0x194   : > { %1754 = vmatprep.mubr.msk.f32.mxu1 %vm2041_vm0, %v2042_v17  ;;  %v2442_v33 = vadd.s32 %v2419_v14, %v844_v24 }
 0x196   : > { %vm863_vm12 = vcmp.lt.s32.totalorder %v2442_v33, 142 }
 0x246   : > { %v716_v58 = vpop.f32.mrb[0].mxu1 }
 0x247   : > { %v717_v59 = vadd.f32 %v2402_v57, %v716_v58  ;;  %v1676_v60 = vpop.f32.mrb[1].mxu1 }
 0x248   : > { %v1516_v60 = vsel %vm863_vm12, 1.0, %v2042_v17 }
 0x249   : > { %v769_v61 = vmul.f32 0.044715, %v717_v59  ;;  %v760_v44 = vmul.f32 0.5, %v717_v59 }
 0x24a   : > { %v721_v62 = vpop.f32.mrb[2].mxu1 }
 0x24b   : > { %v778_v63 = vmul.f32 %v769_v61, %v717_v59  ;;  %v2406_v0 = vadd.f32 %v2402_v57, %v721_v62  ;;  %v1679_v6 = vpop.f32.mrb[3].mxu1 }
 0x24d   : > { %v787_v1 = vmul.f32 %v778_v63, %v717_v59  ;;  %v770_v2 = vmul.f32 0.044715, %v2406_v0  ;;  %v761_v6 = vmul.f32 0.5, %v2406_v0 }
 0x24e   : > { %v726_v3 = vpop.f32.mrb[4].mxu1 }
 0x24f   : > { %v796_v4 = vadd.f32 %v787_v1, %v717_v59  ;;  %v779_v5 = vmul.f32 %v770_v2, %v2406_v0  ;;  %v2412_v7 = vadd.f32 %v2402_v57, %v726_v3  ;;  %v1682_v8 = vpop.f32.mrb[5].mxu1 }
 0x251   : > { %v805_v9 = vmul.f32 0.7978846, %v796_v4  ;;  %v788_v10 = vmul.f32 %v779_v5, %v2406_v0  ;;  %v771_v11 = vmul.f32 0.044715, %v2412_v7 }
 0x252   : > { %v731_v12 = vpop.f32.mrb[6].mxu1 }
 0x253   : > { %1889 = vtanh.f32 %v805_v9  ;;  %v780_v15 = vmul.f32 %v771_v11, %v2412_v7  ;;  %v2423_v16 = vadd.f32 %v2402_v57, %v731_v12  ;;  %v1685_v18 = vpop.f32.mrb[7].mxu1  ;;  %v797_v19 = vadd.f32 %v788_v10, %v2406_v0 }
 0x254   : > { %v2481_v9 = vadd.s32 %v2419_v14, %v846_v53  ;;  %v847_v0 = vadd.s32 32, %v2417_v13 }
 0x255   : > { %v789_v20 = vmul.f32 %v780_v15, %v2412_v7  ;;  %v772_v21 = vmul.f32 0.044715, %v2423_v16  ;;  %v806_v22 = vmul.f32 0.7978846, %v797_v19 }
 0x256   : > { %v736_v23 = vpop.f32.mrb[8].mxu1  ;;  %vm865_vm14 = vcmp.lt.s32.totalorder %v2481_v9, 142 }
 0x257   : > { %v781_v25 = vmul.f32 %v772_v21, %v2423_v16  ;;  %v2435_v26 = vadd.f32 %v2402_v57, %v736_v23  ;;  %v1688_v27 = vpop.f32.mrb[9].mxu1  ;;  %1891 = vtanh.f32 %v806_v22  ;;  %v798_v28 = vadd.f32 %v789_v20, %v2412_v7 }
 0x258   : > { %v762_v20 = vmul.f32 0.5, %v2412_v7  ;;  %v1517_v22 = vsel %vm864_vm13, 1.0, %v2042_v17  ;;  %v2502_v7 = vadd.s32 %v2419_v14, %v847_v0 }
 0x259   : > { %v790_v29 = vmul.f32 %v781_v25, %v2423_v16  ;;  %v773_v30 = vmul.f32 0.044715, %v2435_v26  ;;  %v807_v31 = vmul.f32 0.7978846, %v798_v28 }
 0x25a   : > { %v741_v32 = vpop.f32.mrb[10].mxu1  ;;  %vm866_vm15 = vcmp.lt.s32.totalorder %v2502_v7, 142 }
 0x25b   : > { %v782_v35 = vmul.f32 %v773_v30, %v2435_v26  ;;  %v2447_v36 = vadd.f32 %v2402_v57, %v741_v32  ;;  %v1691_v37 = vpop.f32.mrb[11].mxu1  ;;  %1893 = vtanh.f32 %v807_v31  ;;  %v799_v38 = vadd.f32 %v790_v29, %v2423_v16 }
 0x25c   : > { %v848_v29 = vadd.s32 40, %v2417_v13  ;;  %v1240_v33 = vsel %vm866_vm15, %v1231_v55, 0.0 }
 0x25d   : > { %v1890_v39 = vpop.eup %1889  ;;  %v791_v40 = vmul.f32 %v782_v35, %v2435_v26  ;;  %v774_v41 = vmul.f32 0.044715, %v2447_v36  ;;  %v808_v43 = vmul.f32 0.7978846, %v799_v38  ;;  %v763_v35 = vmul.f32 0.5, %v2423_v16 }
 0x25e   : > { %v746_v45 = vpop.f32.mrb[12].mxu1  ;;  %v823_v46 = vadd.f32 1.0, %v1890_v39  ;;  %v849_v16 = vadd.s32 48, %v2417_v13 }
 0x25f   : > { %v783_v48 = vmul.f32 %v774_v41, %v2447_v36  ;;  %v2461_v49 = vadd.f32 %v2402_v57, %v746_v45  ;;  %v1694_v50 = vpop.f32.mrb[13].mxu1  ;;  %1895 = vtanh.f32 %v808_v43  ;;  %v800_v51 = vadd.f32 %v791_v40, %v2435_v26 }
 0x260   : > { %v832_v52 = vmul.f32 %v823_v46, %v760_v44  ;;  %v1518_v40 = vsel %vm865_vm14, 1.0, %v2042_v17 }
 0x261   : > { %v1892_v54 = vpop.eup %1891  ;;  %v792_v58 = vmul.f32 %v783_v48, %v2447_v36  ;;  %v775_v59 = vmul.f32 0.044715, %v2461_v49  ;;  %v809_v61 = vmul.f32 0.7978846, %v800_v51  ;;  %v764_v48 = vmul.f32 0.5, %v2435_v26 }
 0x262   : > { %v751_v62 = vpop.f32.mrb[14].mxu1  ;;  %v2470_v63 = vmul.f32 %v1515_v42, %v832_v52  ;;  %v824_v1 = vadd.f32 1.0, %v1892_v54  ;;  %v2520_v42 = vadd.s32 %v2419_v14, %v848_v29  ;;  %v1519_v51 = vsel %vm866_vm15, 1.0, %v2042_v17  ;;  %v1525_v29 = vld [vmem:[%s2868_s6] ss:$0 sm:$0xff] }
 0x263   : > { %v784_v2 = vmul.f32 %v775_v59, %v2461_v49  ;;  %v2476_v3 = vadd.f32 %v2402_v57, %v751_v62  ;;  %v1697_v4 = vpop.f32.mrb[15].mxu1  ;;  %1897 = vtanh.f32 %v809_v61  ;;  %v801_v5 = vadd.f32 %v792_v58, %v2447_v36 }
 0x264   : > { %1734 = vmatmul.mubr.f32.vlgmr.msra.gmra.mrb[18].mxu0 %v2470_v63  ;;  %v833_v8 = vmul.f32 %v824_v1, %v761_v6  ;;  %vm867_vm1 = vcmp.lt.s32.totalorder %v2520_v42, 142  ;;  %v2536_v54 = vadd.s32 %v2419_v14, %v849_v16  ;;  %v850_v58 = vadd.s32 56, %v2417_v13 }
 0x265   : > { %v1894_v10 = vpop.eup %1893  ;;  %v793_v11 = vmul.f32 %v784_v2, %v2461_v49  ;;  %v776_v12 = vmul.f32 0.044715, %v2476_v3  ;;  %1736 = vmatprep.mubr.msk.f32.mxu0 %vm2041_vm0, %v2042_v17  ;;  %v810_v15 = vmul.f32 0.7978846, %v801_v5  ;;  %v765_v61 = vmul.f32 0.5, %v2447_v36 }
 0x266   : > { %v756_v18 = vpop.f32.mrb[16].mxu1  ;;  %v2488_v19 = vmul.f32 %v1516_v60, %v833_v8  ;;  %v825_v21 = vadd.f32 1.0, %v1894_v10  ;;  %v1520_v6 = vsel %vm867_vm1, 1.0, %v2042_v17  ;;  %vm868_vm2 = vcmp.lt.s32.totalorder %v2536_v54, 142 }
 0x267   : > { %v785_v23 = vmul.f32 %v776_v12, %v2476_v3  ;;  %v2496_v24 = vadd.f32 %v2402_v57, %v756_v18  ;;  %v1700_v25 = vpop.f32.mrb[17].mxu1  ;;  %1899 = vtanh.f32 %v810_v15  ;;  %v802_v27 = vadd.f32 %v793_v11, %v2461_v49 }
 0x268   : > { %1737 = vmatmul.mubr.f32.gmra.mrb[20].mxu0 %v2488_v19  ;;  %v834_v28 = vmul.f32 %v825_v21, %v762_v20  ;;  %v2550_v2 = vadd.s32 %v2419_v14, %v850_v58  ;;  %v851_v4 = vadd.s32 64, %v2417_v13  ;;  %v766_v8 = vmul.f32 0.5, %v2461_v49 }
 0x269   : > { %v1896_v30 = vpop.eup %1895  ;;  %v794_v31 = vmul.f32 %v785_v23, %v2476_v3  ;;  %v777_v57 = vmul.f32 0.044715, %v2496_v24  ;;  %1739 = vmatprep.mubr.msk.f32.mxu0 %vm2041_vm0, %v2042_v17  ;;  %v811_v32 = vmul.f32 0.7978846, %v802_v27  ;;  %v1521_v10 = vsel %vm868_vm2, 1.0, %v2042_v17 }
 0x26a   : > { %v2509_v34 = vmul.f32 %v1517_v22, %v834_v28  ;;  %v826_v37 = vadd.f32 1.0, %v1896_v30  ;;  %vm869_vm3 = vcmp.lt.s32.totalorder %v2550_v2, 142  ;;  %v2564_v13 = vadd.s32 %v2419_v14, %v851_v4 }
 0x26b   : > { %v803_v38 = vadd.f32 %v794_v31, %v2476_v3  ;;  %v786_v39 = vmul.f32 %v777_v57, %v2496_v24  ;;  %1901 = vtanh.f32 %v811_v32  ;;  %v767_v15 = vmul.f32 0.5, %v2476_v3 }
 0x26c   : > { %1740 = vmatmul.mubr.f32.gmra.mrb[22].mxu0 %v2509_v34  ;;  %v835_v41 = vmul.f32 %v826_v37, %v763_v35  ;;  %v1522_v20 = vsel %vm869_vm3, 1.0, %v2042_v17  ;;  %vm870_vm4 = vcmp.lt.s32.totalorder %v2564_v13, 142  ;;  %v768_v23 = vmul.f32 0.5, %v2496_v24 }
 0x26d   : > { %v1898_v43 = vpop.eup %1897  ;;  %v812_v44 = vmul.f32 0.7978846, %v803_v38  ;;  %v795_v45 = vmul.f32 %v786_v39, %v2496_v24  ;;  %1742 = vmatprep.mubr.msk.f32.mxu0 %vm2041_vm0, %v2042_v17  ;;  %v1523_v3 = vsel %vm870_vm4, 1.0, %v2042_v17 }
 0x26e   : > { %v2526_v46 = vmul.f32 %v1518_v40, %v835_v41  ;;  %v827_v50 = vadd.f32 1.0, %v1898_v43 }
 0x26f   : > { %1903 = vtanh.f32 %v812_v44  ;;  %v804_v52 = vadd.f32 %v795_v45, %v2496_v24  ;;  %v1524_v24 = vld [vmem:[%s2867_s5] ss:$0 sm:$0xff] }
 0x270   : > { %1743 = vmatmul.mubr.f32.gmra.mrb[24].mxu0 %v2526_v46  ;;  %v836_v53 = vmul.f32 %v827_v50, %v764_v48 }
 0x271   : > { %v1900_v59 = vpop.eup %1899  ;;  %1745 = vmatprep.mubr.msk.f32.mxu0 %vm2041_vm0, %v2042_v17  ;;  %v813_v26 = vmul.f32 0.7978846, %v804_v52 }
 0x272   : > { %v2541_v60 = vmul.f32 %v1519_v51, %v836_v53  ;;  %v828_v62 = vadd.f32 1.0, %v1900_v59 }
 0x273   : > { %1905 = vtanh.f32 %v813_v26 }
 0x274   : > { %1746 = vmatmul.mubr.f32.gmra.mrb[26].mxu0 %v2541_v60  ;;  %v837_v1 = vmul.f32 %v828_v62, %v765_v61 }
 0x275   : > { %v1902_v5 = vpop.eup %1901  ;;  %1748 = vmatprep.mubr.msk.f32.mxu0 %vm2041_vm0, %v2042_v17 }
 0x276   : > { %v2555_v36 = vmul.f32 %v1520_v6, %v837_v1  ;;  %v829_v0 = vadd.f32 1.0, %v1902_v5 }
 0x278   : > { %1749 = vmatmul.mubr.f32.gmra.mrb[28].mxu0 %v2555_v36  ;;  %v838_v11 = vmul.f32 %v829_v0, %v766_v8 }
 0x279   : > { %v1904_v12 = vpop.eup %1903  ;;  %1751 = vmatprep.mubr.msk.f32.mxu0 %vm2041_vm0, %v2042_v17 }
 0x27a   : > { %v2569_v49 = vmul.f32 %v1521_v10, %v838_v11  ;;  %v830_v18 = vadd.f32 1.0, %v1904_v12 }
 0x27c   : > { %1752 = vmatmul.mubr.f32.gmra.mrb[30].mxu0 %v2569_v49  ;;  %v839_v21 = vmul.f32 %v830_v18, %v767_v15 }
 0x27d   : > { %v1906_v14 = vpop.eup %1905 }
 0x27e   : > { %v2576_v22 = vmul.f32 %v1522_v20, %v839_v21  ;;  %v831_v25 = vadd.f32 1.0, %v1906_v14  ;;  %v1162_v20 = vld [vmem:[%s2205_s27 + $0x38] sm:$0xff]  ;;  %v1163_v21 = vld [vmem:[%s2205_s27 + $0x40] sm:$0xff]  ;;  %v1166_v14 = vpop.permute.xlu1 %1165  ;;  %s1943_s27 = scalar_lea.vmem %s2786_s25, 1152 }
 0x27f   : > { %p1944_p11 = scmp.ne.s32.totalorder %s2786_s25, %s1943_s27 }
 0x280   : > { %1755 = vmatmul.mubr.f32.vlgmr.msra.gmra.mrb[18].mxu1 %v2576_v22  ;;  %v840_v27 = vmul.f32 %v831_v25, %v768_v23  ;;  %v2640_v25 = vpop.permute.xlu0 %1168 }
 0x281   : > { %1757 = vmatprep.mubr.msk.f32.mxu1 %vm2041_vm0, %v2042_v17  ;;  %vm1191_vm0 = vcmp.eq.s32.totalorder %v2272_v56, %v1166_v14  ;;  %vm1192_vm6 = vcmp.eq.s32.totalorder %v2272_v56, %v2640_v25  ;;  %p1945_p12 = pnand %p1944_p11, %p2140_p5 }
 0x282   : > { %v2585_v28 = vmul.f32 %v1523_v3, %v840_v27  ;;  %v2638_v23 = vpop.permute.xlu1 %1171 }
 0x283   : > { %vm1193_vm5 = vcmp.eq.s32.totalorder %v2272_v56, %v2638_v23  ;;  %p1946_p13 = pneg %p1945_p12 }
 0x284   : > { %1758 = vmatmul.mubr.f32.gmra.mrb[20].mxu1 %v2585_v28  ;;  %v2644_v27 = vpop.permute.xlu0 %1177 }
 0x285   : > { %vm1195_vm8 = vcmp.eq.s32.totalorder %v2272_v56, %v2644_v27  ;;  %v1290_v27 = vmul.f32 %v2526_v46, %v2526_v46 }
 0x286   : > { %v2642_v3 = vpop.permute.xlu1 %1174 }
 0x287   : > { %vm1194_vm7 = vcmp.eq.s32.totalorder %v2272_v56, %v2642_v3  ;;  %v1287_v3 = vmul.f32 %v2470_v63, %v2470_v63  ;;  %v1293_v63 = vmul.f32 %v2569_v49, %v2569_v49 }
 0x337   : > { %v980_v30 = vpop.f32.mrb[18].mxu0 }
 0x338   : > { %v1031_v31 = vadd.f32 %v1524_v24, %v980_v30  ;;  %v2598_v57 = vadd.f32 %v1525_v29, %v980_v30  ;;  %v1735_v17 = vpop.f32.mrb[19].mxu0 }
 0x33a   : > { %1040 = vst [vmem:[%s2600_s30] sm:$0xff] %v1031_v31  ;;  %1065 = vmax.xlane.f32.xlu1 %v2598_v57 }
 0x33b   : > { %v985_v32 = vpop.f32.mrb[20].mxu0 }
 0x33c   : > { %v1032_v35 = vadd.f32 %v1524_v24, %v985_v32  ;;  %v2604_v37 = vadd.f32 %v1525_v29, %v985_v32  ;;  %v1738_v38 = vpop.f32.mrb[21].mxu0 }
 0x33e   : > { %1041 = vst [vmem:[%s2600_s30 + $0x8] sm:$0xff] %v1032_v35  ;;  %1067 = vmax.xlane.f32.xlu0 %v2604_v37 }
 0x33f   : > { %v990_v39 = vpop.f32.mrb[22].mxu0 }
 0x340   : > { %v1033_v40 = vadd.f32 %v1524_v24, %v990_v39  ;;  %v2608_v41 = vadd.f32 %v1525_v29, %v990_v39  ;;  %v1741_v16 = vpop.f32.mrb[23].mxu0 }
 0x342   : > { %1042 = vst [vmem:[%s2600_s30 + $0x10] sm:$0xff] %v1033_v40  ;;  %1069 = vmax.xlane.f32.xlu0 %v2608_v41 }
 0x343   : > { %v995_v43 = vpop.f32.mrb[24].mxu0 }
 0x344   : > { %v1034_v44 = vadd.f32 %v1524_v24, %v995_v43  ;;  %v2612_v45 = vadd.f32 %v1525_v29, %v995_v43  ;;  %v1744_v48 = vpop.f32.mrb[25].mxu0 }
 0x346   : > { %1043 = vst [vmem:[%s2600_s30 + $0x18] sm:$0xff] %v1034_v44  ;;  %1071 = vmax.xlane.f32.xlu1 %v2612_v45  ;;  %v1203_v14 = vsel %vm1194_vm7, %v2612_v45, 0.0 }
 0x347   : > { %v1000_v50 = vpop.f32.mrb[26].mxu0 }
 0x348   : > { %v1035_v51 = vadd.f32 %v1524_v24, %v1000_v50  ;;  %v2616_v52 = vadd.f32 %v1525_v29, %v1000_v50  ;;  %v1747_v53 = vpop.f32.mrb[27].mxu0 }
 0x34a   : > { %1044 = vst [vmem:[%s2600_s30 + $0x20] sm:$0xff] %v1035_v51  ;;  %1073 = vmax.xlane.f32.xlu0 %v2616_v52 }
 0x34b   : > { %v1005_v58 = vpop.f32.mrb[28].mxu0 }
 0x34c   : > { %v1036_v59 = vadd.f32 %v1524_v24, %v1005_v58  ;;  %v2620_v26 = vadd.f32 %v1525_v29, %v1005_v58  ;;  %v1750_v61 = vpop.f32.mrb[29].mxu0 }
 0x34e   : > { %1045 = vst [vmem:[%s2600_s30 + $0x28] sm:$0xff] %v1036_v59  ;;  %1075 = vmax.xlane.f32.xlu1 %v2620_v26 }
 0x34f   : > { %v1010_v62 = vpop.f32.mrb[30].mxu0 }
 0x350   : > { %v1037_v6 = vadd.f32 %v1524_v24, %v1010_v62  ;;  %v2624_v1 = vadd.f32 %v1525_v29, %v1010_v62  ;;  %v1753_v4 = vpop.f32.mrb[31].mxu0 }
 0x352   : > { %1046 = vst [vmem:[%s2600_s30 + $0x30] sm:$0xff] %v1037_v6  ;;  %1077 = vmax.xlane.f32.xlu0 %v2624_v1 }
 0x353   : > { %v1015_v5 = vpop.f32.mrb[18].mxu1 }
 0x354   : > { %v1038_v8 = vadd.f32 %v1524_v24, %v1015_v5  ;;  %v2628_v0 = vadd.f32 %v1525_v29, %v1015_v5  ;;  %v1756_v10 = vpop.f32.mrb[19].mxu1 }
 0x356   : > { %1047 = vst [vmem:[%s2600_s30 + $0x38] sm:$0xff] %v1038_v8  ;;  %1079 = vmax.xlane.f32.xlu1 %v2628_v0 }
 0x357   : > { %v1020_v11 = vpop.f32.mrb[20].mxu1 }
 0x358   : > { %v1039_v12 = vadd.f32 %v1524_v24, %v1020_v11  ;;  %v2632_v15 = vadd.f32 %v1525_v29, %v1020_v11  ;;  %v1759_v18 = vpop.f32.mrb[21].mxu1  ;;  %v2646_v24 = vpop.permute.xlu1 %1180 }
 0x359   : > { %v2648_v29 = vpop.permute.xlu0 %1183  ;;  %vm1196_vm9 = vcmp.eq.s32.totalorder %v2272_v56, %v2646_v24 }
 0x35a   : > { %1048 = vst [vmem:[%s2600_s30 + $0x40] sm:$0xff] %v1039_v12  ;;  %1081 = vmax.xlane.f32.xlu0 %v2632_v15  ;;  %vm1197_vm10 = vcmp.eq.s32.totalorder %v2272_v56, %v2648_v29 }
 0x367   : > { %1186 = vperm.xlu1 %1888, %v1162_v20  }
 0x370   : > { %1189 = vperm.xlu0 %1887, %v1163_v21  }
 0x3c7   : > { %v2650_v30 = vpop.xlane.xlu1 %1065 }
 0x3c8   : > { %v1083_v31 = vsub.f32 %v2598_v57, %v2650_v30 }
 0x3ca   : > { %v1092_v17 = vmul.f32 1.442695, %v1083_v31 }
 0x3cb   : > { %v2654_v32 = vpop.xlane.xlu0 %1067 }
 0x3cc   : > { %1907 = vpow2.f32 %v1092_v17  ;;  %v1084_v35 = vsub.f32 %v2604_v37, %v2654_v32 }
 0x3ce   : > { %v1094_v38 = vmul.f32 1.442695, %v1084_v35 }
 0x3cf   : > { %v2658_v39 = vpop.xlane.xlu0 %1069 }
 0x3d0   : > { %1909 = vpow2.f32 %v1094_v38  ;;  %v1085_v40 = vsub.f32 %v2608_v41, %v2658_v39 }
 0x3d2   : > { %v1096_v16 = vmul.f32 1.442695, %v1085_v40 }
 0x3d3   : > { %v2662_v43 = vpop.xlane.xlu1 %1071 }
 0x3d4   : > { %1911 = vpow2.f32 %v1096_v16  ;;  %v1086_v44 = vsub.f32 %v2612_v45, %v2662_v43 }
 0x3d6   : > { %v1908_v48 = vpop.eup %1907  ;;  %v1098_v50 = vmul.f32 1.442695, %v1086_v44 }
 0x3d7   : > { %1110 = vadd.xlane.f32.xlu1 %v1908_v48  ;;  %v2666_v51 = vpop.xlane.xlu0 %1073  ;;  %v1200_v48 = vsel %vm1191_vm0, %v2598_v57, 0.0  ;;  %v1204_v57 = vsel %vm1195_vm8, %v2616_v52, 0.0 }
 0x3d8   : > { %1913 = vpow2.f32 %v1098_v50  ;;  %v1087_v53 = vsub.f32 %v2616_v52, %v2666_v51  ;;  %v1202_v50 = vsel %vm1193_vm5, %v2608_v41, 0.0  ;;  %v1205_v41 = vsel %vm1196_vm9, %v2620_v26, 0.0 }
 0x3da   : > { %v1910_v58 = vpop.eup %1909  ;;  %v1100_v59 = vmul.f32 1.442695, %v1087_v53  ;;  %v1201_v53 = vsel %vm1192_vm6, %v2604_v37, 0.0  ;;  %v1206_v37 = vsel %vm1197_vm10, %v2624_v1, 0.0 }
 0x3db   : > { %v2670_v61 = vpop.xlane.xlu1 %1075  ;;  %1112 = vadd.xlane.f32.xlu0 %v1910_v58 }
 0x3dc   : > { %1915 = vpow2.f32 %v1100_v59  ;;  %v1088_v62 = vsub.f32 %v2620_v26, %v2670_v61  ;;  %v1289_v26 = vmul.f32 %v2509_v34, %v2509_v34  ;;  %v1295_v34 = vmul.f32 %v2585_v28, %v2585_v28 }
 0x3de   : > { %v1912_v6 = vpop.eup %1911  ;;  %v1102_v4 = vmul.f32 1.442695, %v1088_v62 }
 0x3df   : > { %1114 = vadd.xlane.f32.xlu0 %v1912_v6  ;;  %v2674_v5 = vpop.xlane.xlu0 %1077 }
 0x3e0   : > { %1917 = vpow2.f32 %v1102_v4  ;;  %v1089_v8 = vsub.f32 %v2624_v1, %v2674_v5  ;;  %v1288_v1 = vmul.f32 %v2488_v19, %v2488_v19  ;;  %v1294_v19 = vmul.f32 %v2576_v22, %v2576_v22 }
 0x3e2   : > { %v1914_v10 = vpop.eup %1913  ;;  %v1104_v11 = vmul.f32 1.442695, %v1089_v8 }
 0x3e3   : > { %1116 = vadd.xlane.f32.xlu1 %v1914_v10  ;;  %v2678_v12 = vpop.xlane.xlu1 %1079 }
 0x3e4   : > { %1919 = vpow2.f32 %v1104_v11  ;;  %v1090_v18 = vsub.f32 %v2628_v0, %v2678_v12 }
 0x3e6   : > { %v1916_v20 = vpop.eup %1915  ;;  %v1106_v21 = vmul.f32 1.442695, %v1090_v18  ;;  %v1227_v18 = vld [vmem:[%s2732_s11] sm:$0xff] }
 0x3e7   : > { %1118 = vadd.xlane.f32.xlu0 %v1916_v20  ;;  %v2682_v31 = vpop.xlane.xlu0 %1081  ;;  %v1187_v23 = vpop.permute.xlu1 %1186 }
 0x3e8   : > { %1921 = vpow2.f32 %v1106_v21  ;;  %v1091_v17 = vsub.f32 %v2632_v15, %v2682_v31  ;;  %vm1198_vm0 = vcmp.eq.s32.totalorder %v2272_v56, %v1187_v23 }
 0x3e9   : > { %v1207_v45 = vsel %vm1198_vm0, %v2628_v0, 0.0  ;;  %v1291_v0 = vmul.f32 %v2541_v60, %v2541_v60 }
 0x3ea   : > { %v1918_v35 = vpop.eup %1917  ;;  %v1108_v38 = vmul.f32 1.442695, %v1091_v17 }
 0x3eb   : > { %1120 = vadd.xlane.f32.xlu1 %v1918_v35 }
 0x3ec   : > { %1923 = vpow2.f32 %v1108_v38  ;;  %v1229_v38 = vld [vmem:[%s2732_s11 + $0x10] sm:$0xff] }
 0x3ee   : > { %v1920_v40 = vpop.eup %1919 }
 0x3ef   : > { %1122 = vadd.xlane.f32.xlu0 %v1920_v40  ;;  %v1190_v25 = vpop.permute.xlu0 %1189  ;;  %v1228_v40 = vld [vmem:[%s2732_s11 + $0x8] sm:$0xff] }
 0x3f0   : > { %vm1199_vm5 = vcmp.eq.s32.totalorder %v2272_v56, %v1190_v25  ;;  %v1237_v25 = vsel %vm863_vm12, %v1228_v40, 0.0 }
 0x3f1   : > { %v1208_v52 = vsel %vm1199_vm5, %v2632_v15, 0.0  ;;  %v1292_v15 = vmul.f32 %v2555_v36, %v2555_v36 }
 0x3f2   : > { %v1922_v16 = vpop.eup %1921 }
 0x3f3   : > { %1124 = vadd.xlane.f32.xlu1 %v1922_v16 }
 0x3f6   : > { %v1924_v44 = vpop.eup %1923 }
 0x3f7   : > { %1209 = vadd.xlane.f32.xlu1 %v1200_v48  ;;  %1126 = vadd.xlane.f32.xlu0 %v1924_v44  ;;  %v1236_v44 = vsel %vm862_vm11, %v1227_v18, 0.0  ;;  %vm1263_vm11 = vcmask 7168   ;;  %v1235_v18 = vld [vmem:[%s2732_s11 + $0x40] sm:$0xff] }
 0x3f8   : > { %v1244_v42 = vsel %vm870_vm4, %v1235_v18, 0.0 }
 0x3fb   : > { %1213 = vadd.xlane.f32.xlu1 %v1202_v50  ;;  %1211 = vadd.xlane.f32.xlu0 %v1201_v53 }
 0x3ff   : > { %1217 = vadd.xlane.f32.xlu1 %v1204_v57  ;;  %1215 = vadd.xlane.f32.xlu0 %v1203_v14  ;;  %v1238_v14 = vsel %vm864_vm13, %v1229_v38, 0.0 }
 0x403   : > { %1221 = vadd.xlane.f32.xlu1 %v1206_v37  ;;  %1219 = vadd.xlane.f32.xlu0 %v1205_v41 }
 0x407   : > { %1223 = vadd.xlane.f32.xlu0 %v1207_v45  ;;  %1225 = vadd.xlane.f32.xlu1 %v1208_v52 }
 0x40b   : > { %1296 = vadd.xlane.f32.xlu0 %v1287_v3  ;;  %1298 = vadd.xlane.f32.xlu1 %v1288_v1  ;;  %v1230_v3 = vld [vmem:[%s2732_s11 + $0x18] sm:$0xff] }
 0x40f   : > { %1300 = vadd.xlane.f32.xlu0 %v1289_v26  ;;  %1302 = vadd.xlane.f32.xlu1 %v1290_v27 }
 0x413   : > { %1304 = vadd.xlane.f32.xlu0 %v1291_v0  ;;  %1306 = vadd.xlane.f32.xlu1 %v1292_v15 }
 0x417   : > { %1308 = vadd.xlane.f32.xlu0 %v1293_v63  ;;  %1310 = vadd.xlane.f32.xlu1 %v1294_v19  ;;  %v1239_v63 = vsel %vm865_vm14, %v1230_v3, 0.0 }
 0x41b   : > { %1312 = vadd.xlane.f32.xlu0 %v1295_v34 }
 0x464   : > { %v1111_v24 = vpop.xlane.xlu1 %1110 }
 0x465   : > { %1925 = vlog2.f32 %v1111_v24 }
 0x468   : > { %v1113_v46 = vpop.xlane.xlu0 %1112 }
 0x469   : > { %1927 = vlog2.f32 %v1113_v46 }
 0x46c   : > { %v1115_v60 = vpop.xlane.xlu0 %1114 }
 0x46d   : > { %1929 = vlog2.f32 %v1115_v60 }
 0x46f   : > { %v1926_v58 = vpop.eup %1925 }
 0x470   : > { %v1117_v36 = vpop.xlane.xlu1 %1116  ;;  %v1129_v62 = vmul.f32 0.6931472, %v1926_v58 }
 0x471   : > { %1931 = vlog2.f32 %v1117_v36  ;;  %v1233_v36 = vld [vmem:[%s2732_s11 + $0x30] sm:$0xff] }
 0x472   : > { %v1146_v11 = vadd.f32 %v1129_v62, %v2650_v30 }
 0x473   : > { %v1928_v59 = vpop.eup %1927 }
 0x474   : > { %v1119_v29 = vpop.xlane.xlu0 %1118  ;;  %v1131_v8 = vmul.f32 0.6931472, %v1928_v59 }
 0x475   : > { %1933 = vlog2.f32 %v1119_v29  ;;  %v1232_v29 = vld [vmem:[%s2732_s11 + $0x28] sm:$0xff] }
 0x476   : > { %v1147_v30 = vadd.f32 %v1131_v8, %v2654_v32  ;;  %v1241_v8 = vsel %vm867_vm1, %v1232_v29, 0.0 }
 0x477   : > { %v1930_v28 = vpop.eup %1929 }
 0x478   : > { %v1121_v49 = vpop.xlane.xlu1 %1120  ;;  %v1133_v10 = vmul.f32 0.6931472, %v1930_v28 }
 0x479   : > { %1935 = vlog2.f32 %v1121_v49 }
 0x47a   : > { %v1148_v57 = vadd.f32 %v1133_v10, %v2658_v39 }
 0x47b   : > { %v1932_v4 = vpop.eup %1931 }
 0x47c   : > { %v1123_v22 = vpop.xlane.xlu0 %1122  ;;  %v1135_v50 = vmul.f32 0.6931472, %v1932_v4 }
 0x47d   : > { %1937 = vlog2.f32 %v1123_v22 }
 0x47e   : > { %v1149_v27 = vadd.f32 %v1135_v50, %v2662_v43 }
 0x47f   : > { %v1934_v20 = vpop.eup %1933 }
 0x480   : > { %v1125_v6 = vpop.xlane.xlu1 %1124  ;;  %v1137_v53 = vmul.f32 0.6931472, %v1934_v20  ;;  %v1234_v20 = vld [vmem:[%s2732_s11 + $0x38] sm:$0xff]  ;;  %s1947_s11 = sshll.u32 %s2043_s12, 4  ;;  %s1948_s11 = int_to_ptr.vmem [resolvable:$false] %s1947_s11 }
 0x481   : > { %1939 = vlog2.f32 %v1125_v6  ;;  %v1242_v6 = vsel %vm868_vm2, %v1233_v36, 0.0  ;;  %s1949_s30 = scalar_lea.vmem %s1948_s11, 2304  ;;  %p1950_p0 = scmp.lt.s32.totalorder %s2786_s25, %s1948_s11 }
 0x482   : > { %v1150_v47 = vadd.f32 %v1137_v53, %v2666_v51  ;;  %p1951_p1 = scmp.lt.s32.totalorder %s1949_s30, %s1943_s27 }
 0x483   : > { %v1936_v16 = vpop.eup %1935 }
 0x484   : > { %v1210_v21 = vpop.xlane.xlu1 %1209  ;;  %v1127_v17 = vpop.xlane.xlu0 %1126  ;;  %v1139_v1 = vmul.f32 0.6931472, %v1936_v16  ;;  %p1952_p2 = por %p1951_p1, %p1950_p0 }
 0x485   : > { %v1245_v35 = vsub.f32 %v1146_v11, %v1210_v21  ;;  %1941 = vlog2.f32 %v1127_v17 }
 0x486   : > { %v1151_v7 = vadd.f32 %v1139_v1, %v2670_v61  ;;  %p1953_p3 = pnand %p1952_p2, %p1946_p13 }
 0x487   : > { %v1938_v48 = vpop.eup %1937  ;;  %v1254_v41 = vmul.f32 %v1245_v35, %v1236_v44 }
 0x488   : > { %v1214_v23 = vpop.xlane.xlu1 %1213  ;;  %v1212_v37 = vpop.xlane.xlu0 %1211  ;;  %v1141_v26 = vmul.f32 0.6931472, %v1938_v48  ;;  %v1243_v48 = vsel %vm869_vm3, %v1234_v20, 0.0 }
 0x489   : > { %v1247_v45 = vsub.f32 %v1148_v57, %v1214_v23  ;;  %v1246_v52 = vsub.f32 %v1147_v30, %v1212_v37  ;;  %v1264_v34 = vsel %vm1263_vm11, %v1254_v41, 0.0 }
 0x48a   : > { %v1152_v43 = vadd.f32 %v1141_v26, %v2674_v5 }
 0x48b   : > { %v1256_v39 = vmul.f32 %v1247_v45, %v1238_v14  ;;  %v1255_v32 = vmul.f32 %v1246_v52, %v1237_v25  ;;  %v1940_v0 = vpop.eup %1939 }
 0x48c   : > { %v1218_v15 = vpop.xlane.xlu1 %1217  ;;  %v1216_v19 = vpop.xlane.xlu0 %1215  ;;  %v1143_v58 = vmul.f32 0.6931472, %v1940_v0 }
 0x48d   : > { %v1265_v46 = vsel %vm1263_vm11, %v1255_v32, 0.0  ;;  %v1249_v24 = vsub.f32 %v1150_v47, %v1218_v15  ;;  %v1248_v60 = vsub.f32 %v1149_v27, %v1216_v19  ;;  %v1267_v9 = vsel %vm1263_vm11, %v1256_v39, 0.0 }
 0x48e   : > { %v1266_v51 = vadd.f32 %v1265_v46, %v1264_v34  ;;  %v1153_v54 = vadd.f32 %v1143_v58, %v2678_v12 }
 0x48f   : > { %v1942_v49 = vpop.eup %1941  ;;  %v1258_v22 = vmul.f32 %v1249_v24, %v1240_v33  ;;  %v1257_v59 = vmul.f32 %v1248_v60, %v1239_v63 }
 0x490   : > { %v1145_v62 = vmul.f32 0.6931472, %v1942_v49  ;;  %v1268_v28 = vadd.f32 %v1267_v9, %v1266_v51  ;;  %v1222_v4 = vpop.xlane.xlu1 %1221  ;;  %v1220_v5 = vpop.xlane.xlu0 %1219 }
 0x491   : > { %v1269_v10 = vsel %vm1263_vm11, %v1257_v59, 0.0  ;;  %v1251_v61 = vsub.f32 %v1152_v43, %v1222_v4  ;;  %v1250_v11 = vsub.f32 %v1151_v7, %v1220_v5  ;;  %v1271_v35 = vsel %vm1263_vm11, %v1258_v22, 0.0 }
 0x492   : > { %v1270_v21 = vadd.f32 %v1269_v10, %v1268_v28  ;;  %v1154_v17 = vadd.f32 %v1145_v62, %v2682_v31 }
 0x493   : > { %v1260_v38 = vmul.f32 %v1251_v61, %v1242_v6  ;;  %v1259_v40 = vmul.f32 %v1250_v11, %v1241_v8 }
 0x494   : > { %v1272_v16 = vadd.f32 %v1271_v35, %v1270_v21  ;;  %v1226_v44 = vpop.xlane.xlu1 %1225  ;;  %v1224_v50 = vpop.xlane.xlu0 %1223 }
 0x495   : > { %v1273_v53 = vsel %vm1263_vm11, %v1259_v40, 0.0  ;;  %v1253_v57 = vsub.f32 %v1154_v17, %v1226_v44  ;;  %v1252_v30 = vsub.f32 %v1153_v54, %v1224_v50  ;;  %v1275_v14 = vsel %vm1263_vm11, %v1260_v38, 0.0 }
 0x496   : > { %v1274_v31 = vadd.f32 %v1273_v53, %v1272_v16 }
 0x497   : > { %v1262_v23 = vmul.f32 %v1253_v57, %v1244_v42  ;;  %v1261_v12 = vmul.f32 %v1252_v30, %v1243_v48 }
 0x498   : > { %v1276_v25 = vadd.f32 %v1275_v14, %v1274_v31 }
 0x499   : > { %v1277_v13 = vsel %vm1263_vm11, %v1261_v12, 0.0  ;;  %v1279_v2 = vsel %vm1263_vm11, %v1262_v23, 0.0 }
 0x49a   : > { %v1278_v37 = vadd.f32 %v1277_v13, %v1276_v25 }
 0x49c   : > { %v1280_v41 = vadd.f32 %v1279_v2, %v1278_v37 }
 0x49e   : > { %v1281_v45 = vrot.slane %v1280_v41, 4 }
 0x4a0   : > { %v1282_v52 = vadd.f32 %v1281_v45, %v1280_v41 }
 0x4a2   : > { %v1283_v55 = vrot.slane %v1282_v52, 2 }
 0x4a4   : > { %v1284_v3 = vadd.f32 %v1283_v55, %v1282_v52 }
 0x4a6   : > { %v1285_v1 = vrot.slane %v1284_v3, 1 }
 0x4a8   : > { %v1286_v26 = vadd.f32 %v1285_v1, %v1284_v3 }
 0x4aa   : > { %1331 = vperm.xlu1 %1888, %v1286_v26  }
 0x4ab   : > { %1956 = shalt.err (!%p1953_p3)
}
 0x4ac   : > { %s1957_s28 = scalar_lea.hbm %s2784_s26, 1152  ;;  %s1961_s12 = scalar_lea.hbm %s2871_s9, 2304 }
 0x4ad   : > { %p1958_p4 = scmp.ne.s32.totalorder %s2784_s26, %s1957_s28  ;;  %p1962_p9 = scmp.lt.u32.totalorder %s2784_s26, %s2871_s9 }
 0x4ae   : > { %p1963_p10 = scmp.lt.u32.totalorder %s1961_s12, %s1957_s28  ;;  %p1965_p12 = scmp.lt.u32.totalorder %s1957_s28, %s2784_s26 }
 0x4af   : > { %p1959_p7 = pnand %p1958_p4, %p2140_p5 }
 0x4b0   : > { %p1964_p11 = por %p1963_p10, %p1962_p9 }
 0x4b1   : > { %p1960_p8 = pneg %p1959_p7 }
 0x4b2   : > { %p1966_p13 = por %p1965_p12, %p1964_p11 }
 0x4b4   : > { %p1967_p0 = pnand %p1966_p13, %p1960_p8 }
 0x4b6   : > { %1970 = shalt.err (!%p1967_p0)
}
 0x4b7   : > { %s2044_s27 = smov 128   ;;  %s2045_s30 = smov 8   ;;  %v1297_v39 = vpop.xlane.xlu0 %1296  ;;  %v1299_v32 = vpop.xlane.xlu1 %1298  ;;  %vm1334_vm12 = vcmp.eq.s32.totalorder %v2272_v56, 1  ;;  %vm1328_vm13 = vcmp.eq.s32.totalorder %v2272_v56, 0 }
 0x4b8   : > { %s2877_s0 = scalar_lea.sflag [#allocation3], %s2589_s18  ;;  %v1314_v27 = vadd.f32 %v1299_v32, %v1297_v39  ;;  %s1344_s12 = scalar_lea.sflag [#allocation5], %s2589_s18 }
 0x4b9   : > { %1837 = dma.vmem_to_hbm [thread:$0]  (%p2140_p5), %s2786_s25, 1152, %s2784_s26, %s2877_s0, %s2044_s27, %s2044_s27, %s2045_s30  }
 0x4ba   : > { %s1492_s0 = sshll.u32 %s2589_s18, 3  ;;  %s1528_s25 = sshll.u32 %s2123_s17, 7 }
 0x4bb   : > { %v1301_v47 = vpop.xlane.xlu0 %1300  ;;  %v1303_v33 = vpop.xlane.xlu1 %1302  ;;  %s396_s26 = scalar_lea.vmem [#allocation4], %s1492_s0  ;;  %s2819_s21 = scalar_lea.hbm %s2872_s10, %s1528_s25 }
 0x4bc   : > { %v1315_v0 = vadd.f32 %v1314_v27, %v1301_v47  ;;  %s1373_s29 = sshll.u32 %s396_s26, 4  ;;  %s2046_s11 = smov [#allocation4]   ;;  %s2821_s29 = int_to_ptr.vmem [resolvable:$true] %s1373_s29 }
 0x4bd   : > { %s1971_s17 = scalar_lea.vmem %s2821_s29, 128  ;;  %s1975_s27 = sshll.u32 %s2046_s11, 4  ;;  %s1976_s27 = int_to_ptr.vmem [resolvable:$false] %s1975_s27 }
 0x4be   : > { %v1316_v15 = vadd.f32 %v1315_v0, %v1303_v33  ;;  %p1972_p1 = scmp.ne.s32.totalorder %s2821_s29, %s1971_s17  ;;  %s1977_s30 = scalar_lea.vmem %s1976_s27, 256 }
 0x4bf   : > { %v1305_v63 = vpop.xlane.xlu0 %1304  ;;  %v1307_v34 = vpop.xlane.xlu1 %1306  ;;  %p1978_p4 = scmp.lt.s32.totalorder %s2821_s29, %s1976_s27  ;;  %p1979_p7 = scmp.lt.s32.totalorder %s1977_s30, %s1971_s17 }
 0x4c0   : > { %v1317_v19 = vadd.f32 %v1316_v15, %v1305_v63  ;;  %p1973_p2 = pnand %p1972_p1, %p2140_p5 }
 0x4c1   : > { %p1980_p8 = por %p1979_p7, %p1978_p4 }
 0x4c2   : > { %v1318_v46 = vadd.f32 %v1317_v19, %v1307_v34  ;;  %p1974_p3 = pneg %p1973_p2 }
 0x4c3   : > { %v1309_v24 = vpop.xlane.xlu0 %1308  ;;  %v1311_v36 = vpop.xlane.xlu1 %1310 }
 0x4c4   : > { %v1319_v60 = vadd.f32 %v1318_v46, %v1309_v24  ;;  %p1981_p9 = pnand %p1980_p8, %p1974_p3 }
 0x4c6   : > { %v1320_v29 = vadd.f32 %v1319_v60, %v1311_v36 }
 0x4c7   : > { %v1313_v51 = vpop.xlane.xlu0 %1312 }
 0x4c8   : > { %v1321_v43 = vadd.f32 %v1320_v29, %v1313_v51 }
 0x4ca   : > { %v1322_v7 = vrot.slane %v1321_v43, 4 }
 0x4cc   : > { %v1323_v49 = vadd.f32 %v1322_v7, %v1321_v43 }
 0x4ce   : > { %v1324_v58 = vrot.slane %v1323_v49, 2 }
 0x4d0   : > { %v1325_v9 = vadd.f32 %v1324_v58, %v1323_v49 }
 0x4d2   : > { %v1326_v22 = vrot.slane %v1325_v9, 1 }
 0x4d4   : > { %v1327_v59 = vadd.f32 %v1326_v22, %v1325_v9 }
 0x4d6   : > { %v1335_v28 = vsel %vm1334_vm12, %v1327_v59, 0.0 }
 0x529   : > { %v1332_v62 = vpop.permute.xlu1 %1331 }
 0x52a   : > { %v1336_v6 = vsel %vm1328_vm13, %v1332_v62, %v1335_v28 }
 0x52b   : > { %1337 = vst [vmem:[%s396_s26] sm:$0xff] %v1336_v6 }
 0x52c   : > { %1984 = shalt.err (!%p1981_p9)
}
 0x52d   : > { %s1985_s18 = scalar_lea.hbm %s2819_s21, 128  ;;  %s1989_s26 = scalar_lea.hbm %s2872_s10, 256 }
 0x52e   : > { %p1986_p10 = scmp.ne.s32.totalorder %s2819_s21, %s1985_s18  ;;  %p1990_p13 = scmp.lt.u32.totalorder %s2819_s21, %s2872_s10 }
 0x52f   : > { %p1991_p0 = scmp.lt.u32.totalorder %s1989_s26, %s1985_s18  ;;  %p1993_p2 = scmp.lt.u32.totalorder %s1985_s18, %s2819_s21 }
 0x530   : > { %p1987_p11 = pnand %p1986_p10, %p2140_p5 }
 0x531   : > { %p1992_p1 = por %p1991_p0, %p1990_p13 }
 0x532   : > { %p1988_p12 = pneg %p1987_p11 }
 0x533   : > { %p1994_p3 = por %p1993_p2, %p1992_p1 }
 0x535   : > { %p1995_p4 = pnand %p1994_p3, %p1988_p12 }
 0x537   : > { %1998 = shalt.err (!%p1995_p4)
}
 0x538   : > { %1838 = dma.vmem_to_hbm [thread:$0]  (%p2140_p5), %s2821_s29, 128, %s2819_s21, %s1344_s12  }
 0x539 PF: > { %p1848_p7 = scmp.ge.s32.totalorder %s2037_s16, 2  ;;  %s1385_s17 = sand.u32 1, %s2025_s13  }
 0x53a   : > { %s1386_s11 = scalar_lea.sflag [#allocation3], %s1385_s17 }
 0x53b   : > { %p1842_p8 = pnand %p1848_p7, %p2144_p6 }
 0x53d   : > { %2016 = dma.done.wait (!%p1842_p8), %s1386_s11, 1152  }
 0x53e   : > { %2018 = vsyncadd (!%p1842_p8), %s1386_s11, 4294966144  ;;  %s1395_s27 = scalar_lea.sflag [#allocation5], %s1385_s17 }
 0x53f   : > { %2020 = dma.done.wait (!%p1842_p8), %s1395_s27, 128  }
 0x540   : > { %2022 = vsyncadd (!%p1842_p8), %s1395_s27, 4294967168  ;;  %p24_p5 = scmp.ge.s32.totalorder %s2127_s19, 4   ;;  %s2878_s13 = smov %s2029_s14 }
 0x541   : > { %s2879_s14 = smov %s2033_s15  ;;  %s2880_s15 = smov %s2138_s22 }
 0x542   : > { %s2881_s16 = smov %s2127_s19  ;;  %26 = sbr.rel (!%p24_p5) target bundleno = 7 (0x7), region = 114 }
 0x549   :  { %1400 = vsyncpa [#allocation3], 1 }
 0x54a   :  { %1402 = vsyncpa [#allocation3 + $0x1], 1 }
 0x54b   :  { %1403 = vsyncpa [#allocation5], 1 }
 0x54c   :  { %1405 = vsyncpa [#allocation5 + $0x1], 1 }

</bundles_post_ra>
